<compile_context>
chip_gen: v5e
topology: v5e:2x2
jax: 0.10.0
libtpu: 0.0.40
codegen_flags: <defaults>
</compile_context>

<pallas_src>
import functools

import jax
import jax.numpy as jnp
from jax.experimental import pallas as pl
from jax.experimental.pallas import tpu as pltpu

_NEG_MASK = -1.0e9  # finite "minus infinity" folded into the QK contraction


def _cross_frame_attn_kernel(k_ref, q_ref, v_ref, o_ref, m_sc, l_sc, acc_sc):
    # k_ref:  (KC, Ck+1)  key chunk, last column = additive mask (0 / -1e9)
    # q_ref:  (Ck+1, TQ)  query tile, last row = ones (picks up the mask)
    # v_ref:  (Cv, KC)    value chunk (natural, lane-dense layout)
    # o_ref:  (Cv, TQ)    lane-dense output tile (written on last k step)
    # m_sc/l_sc: (1, TQ) f32 running max / denom;  acc_sc: (Cv, TQ) f32 acc
    kk = pl.program_id(2)

    @pl.when(kk == 0)
    def _():
        m_sc[...] = jnp.full_like(m_sc, -jnp.inf)
        l_sc[...] = jnp.zeros_like(l_sc)
        acc_sc[...] = jnp.zeros_like(acc_sc)

    # scores_T[key, q] = sum_c K'[key, c] * Q'[c, q]   (mask folded in)
    s = jnp.dot(k_ref[...], q_ref[...],
                preferred_element_type=jnp.float32)            # (KC, TQ) f32

    # online softmax over the key axis (axis 0), strictly f32
    m_prev = m_sc[...]                                         # (1, TQ)
    m_new = jnp.maximum(m_prev, jnp.max(s, axis=0, keepdims=True))
    alpha = jnp.exp(m_prev - m_new)                            # (1, TQ)
    p = jnp.exp(s - m_new)                                     # (KC, TQ)
    l_sc[...] = alpha * l_sc[...] + jnp.sum(p, axis=0, keepdims=True)
    acc_sc[...] = alpha * acc_sc[...] + jnp.dot(
        v_ref[...], p.astype(v_ref.dtype),
        preferred_element_type=jnp.float32)                    # (Cv, TQ)
    m_sc[...] = m_new

    @pl.when(kk == pl.num_programs(2) - 1)
    def _():
        # normalize the small (Cv, TQ) result; approx reciprocal + 1 Newton step
        l = l_sc[...]
        inv = pl.reciprocal(l, approx=True)
        inv = inv * (2.0 - l * inv)
        o_ref[...] = (acc_sc[...] * inv).astype(o_ref.dtype)


def _pick_block(n, cap, quantum=128):
    """Largest multiple of `quantum` that divides n and is <= cap; else n."""
    best = 0
    d = quantum
    limit = min(cap, n)
    while d <= limit:
        if n % d == 0:
            best = d
        d += quantum
    return best if best > 0 else n


def _vmem_bytes(shape, dtype):
    """Crude padded-VMEM footprint of one block (lane->128, sublane->8/16)."""
    itemsize = jnp.dtype(dtype).itemsize
    s = list(shape)
    s[-1] = -(-s[-1] // 128) * 128
    if len(s) >= 2:
        sub = 8 * max(1, 4 // itemsize)
        s[-2] = -(-s[-2] // sub) * sub
    n = 1
    for d in s:
        n *= d
    return n * itemsize


def cross_frame_attention(memory_keys, memory_values, query_query, disparity,
                          sequence_index, *, valid_dis_range,
                          matmul_norm=False, compute_dtype=jnp.bfloat16,
                          tq_max=256, kc_max=512):
    S, B, Ck, H, W = memory_keys.shape
    _, _, Cv, _, _ = memory_values.shape
    assert query_query.shape[1] == Ck
    HW = H * W
    SHW = S * HW
    radius = valid_dis_range / 8.0
    # NOTE: self.weight (= 0.2 / S / H / W) is computed but unused in the
    # reference forward pass, so it is intentionally omitted.

    tq = _pick_block(HW, tq_max)     # query tile (lane axis), 256 on v6e/v7x
    kc = _pick_block(SHW, kc_max)    # key chunk  (inner "arbitrary" grid axis)

    # ---- additive mask per key: 0 where |dist * disparity| > radius else -1e9
    # (finite value so fully-masked chunks stay NaN-free in the online softmax)
    dist = jnp.sqrt((sequence_index[:, :, 1] - 5.0) ** 2
                    + (sequence_index[:, :, 0] - 5.0) ** 2)          # (B, S)
    td = dist[:, :, None] * disparity.reshape(B, 1, HW)              # (B, S, HW)
    large = (td > radius) | (td < -radius)
    mask_col = jnp.where(large, 0.0, _NEG_MASK).astype(compute_dtype)
    mask_col = mask_col.reshape(B, SHW, 1)

    # ---- K' = [K_T | mask]  (B, S*HW, Ck+1), lane-dense transposed-score form
    keys_t = jnp.transpose(memory_keys, (1, 0, 3, 4, 2)).reshape(B, SHW, Ck)
    keys_aug = jnp.concatenate([keys_t.astype(compute_dtype), mask_col], -1)

    # ---- Q' = [scale*Q ; 1]  (B, Ck+1, HW); scale applied once, in f32
    q = query_query.reshape(B, Ck, HW).astype(jnp.float32)
    if matmul_norm:
        q = q * (float(Ck) ** -0.5)
    q_aug = jnp.concatenate(
        [q.astype(compute_dtype), jnp.ones((B, 1, HW), dtype=compute_dtype)], 1)

    # ---- V natural layout  (B, Cv, S*HW)
    vals = jnp.transpose(memory_values, (1, 2, 0, 3, 4)).reshape(B, Cv, SHW)
    vals = vals.astype(compute_dtype)

    out_dtype = query_query.dtype
    Ck1 = Ck + 1

    # explicit VMEM budget (double-buffered blocks + scratch), with headroom,
    # capped at 64 MiB so the same plan is valid on v7x.
    est = 2 * (_vmem_bytes((kc, Ck1), compute_dtype)
               + _vmem_bytes((Ck1, tq), compute_dtype)
               + _vmem_bytes((Cv, kc), compute_dtype)
               + _vmem_bytes((Cv, tq), out_dtype)) \
        + 2 * _vmem_bytes((1, tq), jnp.float32) \
        + _vmem_bytes((Cv, tq), jnp.float32)
    vmem_limit = int(min(64 << 20, max(32 << 20, 4 * est)))

    out = pl.pallas_call(
        _cross_frame_attn_kernel,
        out_shape=jax.ShapeDtypeStruct((B, Cv, HW), out_dtype),
        # B outermost, query tile next (both parallel -> megacore), key chunk
        # innermost and "arbitrary" (online-softmax accumulation axis).
        grid=(B, HW // tq, SHW // kc),
        in_specs=[
            pl.BlockSpec((None, kc, Ck1), lambda b, t, k: (b, k, 0)),   # K'
            pl.BlockSpec((None, Ck1, tq), lambda b, t, k: (b, 0, t)),   # Q'
            pl.BlockSpec((None, Cv, kc), lambda b, t, k: (b, 0, k)),    # V
        ],
        out_specs=pl.BlockSpec((None, Cv, tq), lambda b, t, k: (b, 0, t)),
        scratch_shapes=[
            pltpu.VMEM((1, tq), jnp.float32),    # running max
            pltpu.VMEM((1, tq), jnp.float32),    # running denom
            pltpu.VMEM((Cv, tq), jnp.float32),   # running output accumulator
        ],
        compiler_params=pltpu.CompilerParams(
            dimension_semantics=("parallel", "parallel", "arbitrary"),
            vmem_limit_bytes=vmem_limit),
    )(keys_aug, q_aug, vals)

    # output is already (B, Cv, HW): reshape straight back, no transpose
    return out.reshape(B, Cv, H, W)


def _reference(memory_keys, memory_values, query_query, disparity,
               sequence_index, *, valid_dis_range, matmul_norm=False):
    """Pure-JAX transcription of the PyTorch forward, for verification."""
    S, B, Ck, H, W = memory_keys.shape
    _, _, Cv, _, _ = memory_values.shape
    HW, SHW = H * W, S * H * W
    radius = valid_dis_range / 8.0
    keys = jnp.transpose(memory_keys, (1, 2, 0, 3, 4)).reshape(B, Ck, SHW)
    q = jnp.transpose(query_query.reshape(B, Ck, HW), (0, 2, 1))
    attn = jnp.einsum("bqc,bck->bqk", q, keys)
    if matmul_norm:
        attn = attn * (Ck ** -0.5)
    dist = jnp.sqrt((sequence_index[:, :, 1] - 5.0) ** 2
                    + (sequence_index[:, :, 0] - 5.0) ** 2)
    td = dist[:, :, None, None, None] * disparity[:, None]
    large = (td > radius) | (td < -radius)
    mask = jnp.where(large, 0.0, -jnp.inf).astype(jnp.float32)
    mask = jnp.transpose(mask, (0, 2, 1, 3, 4)).reshape(B, 1, SHW)
    attn = jax.nn.softmax(attn + mask, axis=-1)
    vals = jnp.transpose(memory_values, (1, 2, 0, 3, 4)).reshape(B, Cv, SHW)
    vals = jnp.transpose(vals, (0, 2, 1))
    mem = jnp.einsum("bqk,bkc->bqc", attn, vals)
    return jnp.transpose(mem, (0, 2, 1)).reshape(B, Cv, H, W)


if __name__ == "__main__":
    S, B, Ck, Cv, H, W = 4, 2, 32, 32, 16, 16
    valid_dis_range = 4.0  # -> radius = 0.5

    key = jax.random.PRNGKey(0)
    k1, k2, k3, k4, k5 = jax.random.split(key, 5)
    memory_keys = jax.random.normal(k1, (S, B, Ck, H, W), dtype=jnp.float32)
    memory_values = jax.random.normal(k2, (S, B, Cv, H, W), dtype=jnp.float32)
    query_query = jax.random.normal(k3, (B, Ck, H, W), dtype=jnp.float32)
    # Disparity magnitude bounded away from 0: pixels where *every* frame is
    # masked are NaN in the original PyTorch module (softmax over all -inf);
    # with the finite mask fold they become a uniform softmax instead.  The
    # test stays in the well-defined domain while still exercising the mask
    # (including fully-masked key *chunks* for the online softmax).
    disp_mag = jax.random.uniform(k4, (B, 1, H, W), minval=0.12, maxval=0.2)
    disp_sign = jnp.where(jax.random.bernoulli(k5, 0.5, (B, 1, H, W)), 1.0, -1.0)
    disparity = (disp_mag * disp_sign).astype(jnp.float32)
    sequence_index = jnp.array(
        [[[1.0, 2.0], [7.0, 3.0], [9.0, 9.0], [0.0, 6.0]],
         [[2.0, 8.0], [6.0, 1.0], [3.0, 3.0], [8.0, 5.0]]], dtype=jnp.float32)

    ref = jax.block_until_ready(_reference(
        memory_keys, memory_values, query_query, disparity, sequence_index,
        valid_dis_range=valid_dis_range, matmul_norm=False))

    # f32 compute path (near-exactness check)
    out_f32 = jax.block_until_ready(cross_frame_attention(
        memory_keys, memory_values, query_query, disparity, sequence_index,
        valid_dis_range=valid_dis_range, matmul_norm=False,
        compute_dtype=jnp.float32))
    assert out_f32.shape == (B, Cv, H, W)
    assert jnp.allclose(out_f32, ref, atol=1e-2, rtol=1e-2), (
        "f32 kernel mismatch vs pure-JAX reference")

    # bf16 matmul operands (v5e/v6e/v7x fast path), f32 accumulation + softmax
    out_bf16 = jax.block_until_ready(cross_frame_attention(
        memory_keys, memory_values, query_query, disparity, sequence_index,
        valid_dis_range=valid_dis_range, matmul_norm=False,
        compute_dtype=jnp.bfloat16))
    assert jnp.allclose(out_bf16, ref, atol=5e-2, rtol=5e-2), (
        "bf16 kernel mismatch vs pure-JAX reference")

    # matmul_norm=True path (scale folded into Q in the wrapper, in f32)
    ref_n = jax.block_until_ready(_reference(
        memory_keys, memory_values, query_query, disparity, sequence_index,
        valid_dis_range=valid_dis_range, matmul_norm=True))
    out_n = jax.block_until_ready(cross_frame_attention(
        memory_keys, memory_values, query_query, disparity, sequence_index,
        valid_dis_range=valid_dis_range, matmul_norm=True,
        compute_dtype=jnp.float32))
    assert jnp.allclose(out_n, ref_n, atol=1e-2, rtol=1e-2), (
        "matmul_norm kernel mismatch vs pure-JAX reference")

    print("KERNEL_OK")
</pallas_src>

<mosaic_0001>
module attributes {stable_mosaic.version = 11 : i64} {
  func.func @_cross_frame_attn_kernel(%arg0: i32, %arg1: i32, %arg2: i32, %arg3: memref<1x512x33xf32, #tpu.memory_space<vmem>>, %arg4: memref<1x33x256xf32, #tpu.memory_space<vmem>>, %arg5: memref<1x32x512xf32, #tpu.memory_space<vmem>>, %arg6: memref<1x32x256xf32, #tpu.memory_space<vmem>>, %arg7: memref<1x256xf32, #tpu.memory_space<vmem>>, %arg8: memref<1x256xf32, #tpu.memory_space<vmem>>, %arg9: memref<32x256xf32, #tpu.memory_space<vmem>>) attributes {dimension_semantics = [#tpu.dimension_semantics<parallel>, #tpu.dimension_semantics<parallel>, #tpu.dimension_semantics<arbitrary>], iteration_bounds = array<i64: 2, 1, 2>, scalar_prefetch = 0 : i64, scratch_operands = 3 : i64, tpu.core_type = #tpu.core_type<tc>, window_params = [{transform_indices = @transform_0, window_bounds = array<i64: 1, 512, 33>}, {transform_indices = @transform_1, window_bounds = array<i64: 1, 33, 256>}, {transform_indices = @transform_2, window_bounds = array<i64: 1, 32, 512>}, {transform_indices = @transform_3, window_bounds = array<i64: 1, 32, 256>}]} {
    %c0_i32 = arith.constant 0 : i32
    %0 = arith.cmpi eq, %arg2, %c0_i32 : i32
    %1 = arith.extui %0 : i1 to i32
    %c0_i32_0 = arith.constant 0 : i32
    %2 = arith.cmpi ne, %1, %c0_i32_0 : i32
    scf.if %2 {
      %cst_25 = arith.constant 0xFF800000 : f32
      %35 = vector.broadcast %cst_25 : f32 to vector<1x256xf32>
      %c0_26 = arith.constant 0 : index
      %c0_27 = arith.constant 0 : index
      %36 = vector.load %arg7[%c0_26, %c0_27] : memref<1x256xf32, #tpu.memory_space<vmem>>, vector<1x256xf32>
      tpu.vector_store %arg7[%c0_26, %c0_27], %35 {strides = array<i32>} : memref<1x256xf32, #tpu.memory_space<vmem>>, vector<1x256xf32>,
      %cst_28 = arith.constant 0.000000e+00 : f32
      %37 = vector.broadcast %cst_28 : f32 to vector<1x256xf32>
      %c0_29 = arith.constant 0 : index
      %c0_30 = arith.constant 0 : index
      %38 = vector.load %arg8[%c0_29, %c0_30] : memref<1x256xf32, #tpu.memory_space<vmem>>, vector<1x256xf32>
      tpu.vector_store %arg8[%c0_29, %c0_30], %37 {strides = array<i32>} : memref<1x256xf32, #tpu.memory_space<vmem>>, vector<1x256xf32>,
      %cst_31 = arith.constant 0.000000e+00 : f32
      %39 = vector.broadcast %cst_31 : f32 to vector<32x256xf32>
      %c0_32 = arith.constant 0 : index
      %c0_33 = arith.constant 0 : index
      %40 = vector.load %arg9[%c0_32, %c0_33] : memref<32x256xf32, #tpu.memory_space<vmem>>, vector<32x256xf32>
      tpu.vector_store %arg9[%c0_32, %c0_33], %39 {strides = array<i32>} : memref<32x256xf32, #tpu.memory_space<vmem>>, vector<32x256xf32>,
    } else {
    }
    %c0 = arith.constant 0 : index
    %c0_1 = arith.constant 0 : index
    %c0_2 = arith.constant 0 : index
    %3 = vector.load %arg3[%c0, %c0_1, %c0_2] : memref<1x512x33xf32, #tpu.memory_space<vmem>>, vector<1x512x33xf32>
    %4 = vector.shape_cast %3 : vector<1x512x33xf32> to vector<512x33xf32>
    %c0_3 = arith.constant 0 : index
    %c0_4 = arith.constant 0 : index
    %c0_5 = arith.constant 0 : index
    %5 = vector.load %arg4[%c0_3, %c0_4, %c0_5] : memref<1x33x256xf32, #tpu.memory_space<vmem>>, vector<1x33x256xf32>
    %6 = vector.shape_cast %5 : vector<1x33x256xf32> to vector<33x256xf32>
    %cst = arith.constant dense<0.000000e+00> : vector<512x256xf32>
    %7 = tpu.matmul %4, %6, %cst {dimension_numbers = #tpu.dot_dimension_numbers<[1], [0], [0], [1], [0, 0, 1, 1], [], []>} : vector<512x33xf32>, vector<33x256xf32>, vector<512x256xf32> -> vector<512x256xf32>
    %c0_6 = arith.constant 0 : index
    %c0_7 = arith.constant 0 : index
    %8 = vector.load %arg7[%c0_6, %c0_7] : memref<1x256xf32, #tpu.memory_space<vmem>>, vector<1x256xf32>
    %cst_8 = arith.constant dense<0xFF800000> : vector<256xf32>
    %9 = vector.multi_reduction <maximumf>, %7, %cst_8 [0] : vector<512x256xf32> to vector<256xf32>
    %10 = vector.shape_cast %9 : vector<256xf32> to vector<1x256xf32>
    %11 = arith.maximumf %8, %10 : vector<1x256xf32>
    %12 = arith.subf %8, %11 : vector<1x256xf32>
    %13 = math.exp %12 : vector<1x256xf32>
    %14 = vector.broadcast %11 : vector<1x256xf32> to vector<512x256xf32>
    %15 = arith.subf %7, %14 : vector<512x256xf32>
    %16 = math.exp %15 : vector<512x256xf32>
    %c0_9 = arith.constant 0 : index
    %c0_10 = arith.constant 0 : index
    %17 = vector.load %arg8[%c0_9, %c0_10] : memref<1x256xf32, #tpu.memory_space<vmem>>, vector<1x256xf32>
    %18 = arith.mulf %13, %17 : vector<1x256xf32>
    %cst_11 = arith.constant dense<0.000000e+00> : vector<256xf32>
    %19 = vector.multi_reduction <add>, %16, %cst_11 [0] : vector<512x256xf32> to vector<256xf32>
    %20 = vector.shape_cast %19 : vector<256xf32> to vector<1x256xf32>
    %21 = arith.addf %18, %20 : vector<1x256xf32>
    %c0_12 = arith.constant 0 : index
    %c0_13 = arith.constant 0 : index
    %22 = vector.load %arg8[%c0_12, %c0_13] : memref<1x256xf32, #tpu.memory_space<vmem>>, vector<1x256xf32>
    tpu.vector_store %arg8[%c0_12, %c0_13], %21 {strides = array<i32>} : memref<1x256xf32, #tpu.memory_space<vmem>>, vector<1x256xf32>,
    %c0_14 = arith.constant 0 : index
    %c0_15 = arith.constant 0 : index
    %23 = vector.load %arg9[%c0_14, %c0_15] : memref<32x256xf32, #tpu.memory_space<vmem>>, vector<32x256xf32>
    %24 = vector.broadcast %13 : vector<1x256xf32> to vector<32x256xf32>
    %25 = arith.mulf %24, %23 : vector<32x256xf32>
    %c0_16 = arith.constant 0 : index
    %c0_17 = arith.constant 0 : index
    %c0_18 = arith.constant 0 : index
    %26 = vector.load %arg5[%c0_16, %c0_17, %c0_18] : memref<1x32x512xf32, #tpu.memory_space<vmem>>, vector<1x32x512xf32>
    %27 = vector.shape_cast %26 : vector<1x32x512xf32> to vector<32x512xf32>
    %cst_19 = arith.constant dense<0.000000e+00> : vector<32x256xf32>
    %28 = tpu.matmul %27, %16, %cst_19 {dimension_numbers = #tpu.dot_dimension_numbers<[1], [0], [0], [1], [0, 0, 1, 1], [], []>} : vector<32x512xf32>, vector<512x256xf32>, vector<32x256xf32> -> vector<32x256xf32>
    %29 = arith.addf %25, %28 : vector<32x256xf32>
    %c0_20 = arith.constant 0 : index
    %c0_21 = arith.constant 0 : index
    %30 = vector.load %arg9[%c0_20, %c0_21] : memref<32x256xf32, #tpu.memory_space<vmem>>, vector<32x256xf32>
    tpu.vector_store %arg9[%c0_20, %c0_21], %29 {strides = array<i32>} : memref<32x256xf32, #tpu.memory_space<vmem>>, vector<32x256xf32>,
    %c0_22 = arith.constant 0 : index
    %c0_23 = arith.constant 0 : index
    %31 = vector.load %arg7[%c0_22, %c0_23] : memref<1x256xf32, #tpu.memory_space<vmem>>, vector<1x256xf32>
    tpu.vector_store %arg7[%c0_22, %c0_23], %11 {strides = array<i32>} : memref<1x256xf32, #tpu.memory_space<vmem>>, vector<1x256xf32>,
    %c1_i32 = arith.constant 1 : i32
    %32 = arith.cmpi eq, %arg2, %c1_i32 : i32
    %33 = arith.extui %32 : i1 to i32
    %c0_i32_24 = arith.constant 0 : i32
    %34 = arith.cmpi ne, %33, %c0_i32_24 : i32
    scf.if %34 {
      %c0_25 = arith.constant 0 : index
      %c0_26 = arith.constant 0 : index
      %35 = vector.load %arg8[%c0_25, %c0_26] : memref<1x256xf32, #tpu.memory_space<vmem>>, vector<1x256xf32>
      %36 = tpu.reciprocal %35 {approx = true} : vector<1x256xf32> -> vector<1x256xf32>
      %37 = arith.mulf %35, %36 : vector<1x256xf32>
      %cst_27 = arith.constant 2.000000e+00 : f32
      %38 = vector.broadcast %cst_27 : f32 to vector<1x256xf32>
      %39 = arith.subf %38, %37 : vector<1x256xf32>
      %40 = arith.mulf %36, %39 : vector<1x256xf32>
      %c0_28 = arith.constant 0 : index
      %c0_29 = arith.constant 0 : index
      %41 = vector.load %arg9[%c0_28, %c0_29] : memref<32x256xf32, #tpu.memory_space<vmem>>, vector<32x256xf32>
      %42 = vector.broadcast %40 : vector<1x256xf32> to vector<32x256xf32>
      %43 = arith.mulf %41, %42 : vector<32x256xf32>
      %c0_30 = arith.constant 0 : index
      %c0_31 = arith.constant 0 : index
      %c0_32 = arith.constant 0 : index
      %44 = vector.load %arg6[%c0_30, %c0_31, %c0_32] : memref<1x32x256xf32, #tpu.memory_space<vmem>>, vector<1x32x256xf32>
      %45 = vector.shape_cast %44 : vector<1x32x256xf32> to vector<32x256xf32>
      %46 = vector.shape_cast %43 : vector<32x256xf32> to vector<1x32x256xf32>
      tpu.vector_store %arg6[%c0_30, %c0_31, %c0_32], %46 {strides = array<i32>} : memref<1x32x256xf32, #tpu.memory_space<vmem>>, vector<1x32x256xf32>,
    } else {
    }
    return
  }
  func.func @transform_0(%arg0: i32, %arg1: i32, %arg2: i32) -> (i32, i32, i32) {
    %c0_i32 = arith.constant 0 : i32
    %c0_i32_0 = arith.constant 0 : i32
    return %arg0, %arg2, %c0_i32 : i32, i32, i32
  }
  func.func @transform_1(%arg0: i32, %arg1: i32, %arg2: i32) -> (i32, i32, i32) {
    %c0_i32 = arith.constant 0 : i32
    %c0_i32_0 = arith.constant 0 : i32
    return %arg0, %c0_i32, %arg1 : i32, i32, i32
  }
  func.func @transform_2(%arg0: i32, %arg1: i32, %arg2: i32) -> (i32, i32, i32) {
    %c0_i32 = arith.constant 0 : i32
    %c0_i32_0 = arith.constant 0 : i32
    return %arg0, %c0_i32, %arg2 : i32, i32, i32
  }
  func.func @transform_3(%arg0: i32, %arg1: i32, %arg2: i32) -> (i32, i32, i32) {
    %c0_i32 = arith.constant 0 : i32
    %c0_i32_0 = arith.constant 0 : i32
    return %arg0, %c0_i32, %arg1 : i32, i32, i32
  }
}

</mosaic_0001>

<bundles_post_ra>
// kernel: tpu_custom_call.1
= control target key start
LH: loop header
LB: loop body
LE: loop exit
PB: predicated region body
PF: predicated region fallthrough
CT: control target
= control target key end

     0   :  { %s4428_s0 = inlined_call_operand.vmem [shape: f32[2,1024,33], index: 0, kind: input, shape index: {}]   ;;  %s4429_s1 = inlined_call_operand.vmem [shape: f32[2,33,256], index: 1, kind: input, shape index: {}]   ;;  %s4430_s2 = inlined_call_operand.vmem [shape: f32[2,32,1024], index: 2, kind: input, shape index: {}]   ;;  %s4431_s3 = inlined_call_operand.hbm [shape: f32[2,32,256], index: 3, kind: output, shape index: {}]  }
   0x1   :  { %4557 = sst [smem:[#allocation106_spill]] %s4430_s2 }
   0x2   :  { %8 = vsyncpa [#allocation7], 0 }
   0x3   :  { %10 = vsyncpa [#allocation7 + $0x1], 0  ;;  %s2833_s12 = smov 0   ;;  %s2835_s13 = smov 0  }
   0x4   :  { %s2837_s14 = smov 0   ;;  %s2839_s15 = smov 0  }
   0x5   :  { %s2841_s16 = smov 0   ;;  %s2843_s17 = smov 0  }
   0x6   :  { %s2845_s18 = smov 0   ;;  %s2847_s19 = smov 0  }
   0x7   :  { %s2849_s20 = smov 0   ;;  %s2851_s21 = smov 0  }
   0x8 LB: > { %4558 = sst [smem:[#allocation9_spill]] %s2803_s20  ;;  %s2182_s22 = sadd.s32 4294967295, %s2807_s21   ;;  %s2807_s21 = sphi %s2851_s21, %s16_s21   ;;  %s2803_s20 = sphi %s2849_s20, %s4839_s20   ;;  %s2799_s19 = sphi %s2847_s19, %s4846_s19   ;;  %s2795_s18 = sphi %s2845_s18, %s4837_s18   ;;  %s2791_s17 = sphi %s2843_s17, %s4845_s17   ;;  %s2787_s16 = sphi %s2841_s16, %s4844_s16   ;;  %s2783_s15 = sphi %s2839_s15, %s4843_s15   ;;  %s2779_s14 = sphi %s2837_s14, %s4842_s14   ;;  %s2775_s13 = sphi %s2835_s13, %s4841_s13   ;;  %s2771_s12 = sphi %s2833_s12, %s4840_s12  }
   0x9   : > { %s2183_s23 = sadd.s32 4294967294, %s2807_s21   ;;  %s28_s24 = sadd.s32 1, %s2799_s19 }
   0xa   : > { %s35_s25 = sadd.s32 1, %s2803_s20  ;;  %p29_p0 = scmp.ge.s32.totalorder %s28_s24, 2 }
   0xb   : > { %s100_s26 = sadd.s32 1, %s2787_s16  ;;  %p107_p1 = scmp.ne.s32.totalorder %s2787_s16, %s2783_s15 }
   0xc   : > { %p108_p2 = scmp.eq.s32.totalorder %s2807_s21, 0  ;;  %s4848_s24 = smov (%p29_p0, %s28_s24), 0 }
   0xd   : > { %4559 = sst [smem:[#allocation10_spill]] %s4848_s24  ;;  %s4850_s25 = smov (!%p29_p0, %s35_s25), %s2803_s20 }
   0xe   : > { %s96_s27 = ssub.s32 %s2799_s19, %s4848_s24  ;;  %p2896_p3 = por %p108_p2, %p107_p1 }
   0xf   : > { %p37_p4 = scmp.ge.s32.totalorder %s4850_s25, 2  ;;  %s128_s29 = sadd.s32 1, %s2779_s14 }
  0x10   : > { %p138_p5 = scmp.ne.s32.totalorder %s2779_s14, %s2775_s13  ;;  %p139_p6 = scmp.eq.s32.totalorder %s2182_s22, 3 }
  0x11   : > { %s4852_s25 = smov (%p37_p4, %s4850_s25), 0  ;;  %p144_p8 = scmp.ne.s32.totalorder %s2775_s13, %s2771_s12 }
  0x12   : > { %4561 = sst [smem:[#allocation11_spill]] %s4852_s25  ;;  %p2905_p7 = por %p139_p6, %p138_p5 }
  0x13   : > { %s95_s4 = ssub.s32 %s2803_s20, %s4852_s25  ;;  %p145_p9 = scmp.eq.s32.totalorder %s2183_s23, 3 }
  0x14   : > { %s97_s5 = sor.u32 %s96_s27, %s95_s4  ;;  %p126_p10 = scmp.eq.s32.totalorder %s95_s4, 0 }
  0x15   : > { %p98_p11 = scmp.eq.s32.totalorder %s97_s5, 0  ;;  %p2913_p12 = por %p145_p9, %p144_p8 }
  0x16   : > { %s2918_s7 = scalar_select %p126_p10, %s2779_s14, %s128_s29  }
  0x17   : > { %s2921_s8 = scalar_select %p98_p11, %s2787_s16, %s100_s26  }
  0x18   : > { %p2185_p13 = scmp.ge.s32.totalorder %s2807_s21, 4 }
  0x1a   : > { %161 = sbr.rel (%p2185_p13) target bundleno = 57 (0x39), region = 16 }
  0x1f   : > { %190 = sbr.rel (!%p2896_p3) target bundleno = 57 (0x39), region = 28  ;;  %s192_s9 = sand.u32 (%p2896_p3), 1, %s2787_s16  }
  0x20   : > { %s2187_s10 = sshll.u32 (%p2896_p3), %s2799_s19, 2  ;;  %s2186_s11 = sshll.u32 (%p2896_p3), %s192_s9, 7 }
  0x21   : > { %s2188_s22 = sshll.u32 (%p2896_p3), %s2803_s20, 5  ;;  %s4564_s2 = sld [smem:[#allocation106_spill]] (%p2896_p3) }
  0x22   : > { %s197_s23 = sadd.s32 (%p2896_p3), %s2188_s22, %s2187_s10  ;;  %s194_s28 = scalar_lea.vmem (%p2896_p3), [#allocation5], %s2186_s11 }
  0x23   : > { %s2189_s27 = sshll.u32 (%p2896_p3), %s197_s23, 3 }
  0x27   : > { %s2932_s26 = scalar_lea.vmem %s4564_s2, %s2189_s27 }
  0x28   : > { %v212_v0 = vld [vmem:[%s2932_s26] sm:$0xff]  ;;  %v214_v1 = vld [vmem:[%s2932_s26 + $0x8] sm:$0xff]  ;;  %v216_v2 = vld [vmem:[%s2932_s26 + $0x10] sm:$0xff] }
  0x29   : > { %213 = vst [vmem:[%s194_s28] sm:$0xff] %v212_v0  ;;  %v218_v3 = vld [vmem:[%s2932_s26 + $0x18] sm:$0xff]  ;;  %v220_v4 = vld [vmem:[%s2932_s26 + $0x40] sm:$0xff]  ;;  %v222_v5 = vld [vmem:[%s2932_s26 + $0x48] sm:$0xff] }
  0x2a   : > { %215 = vst [vmem:[%s194_s28 + $0x8] sm:$0xff] %v214_v1  ;;  %v224_v6 = vld [vmem:[%s2932_s26 + $0x50] sm:$0xff]  ;;  %v226_v7 = vld [vmem:[%s2932_s26 + $0x58] sm:$0xff]  ;;  %v228_v8 = vld [vmem:[%s2932_s26 + $0x80] sm:$0xff] }
  0x2b   : > { %217 = vst [vmem:[%s194_s28 + $0x10] sm:$0xff] %v216_v2  ;;  %v230_v9 = vld [vmem:[%s2932_s26 + $0x88] sm:$0xff]  ;;  %v232_v10 = vld [vmem:[%s2932_s26 + $0x90] sm:$0xff]  ;;  %v234_v11 = vld [vmem:[%s2932_s26 + $0x98] sm:$0xff] }
  0x2c   : > { %219 = vst [vmem:[%s194_s28 + $0x18] sm:$0xff] %v218_v3  ;;  %v236_v12 = vld [vmem:[%s2932_s26 + $0xc0] sm:$0xff]  ;;  %v238_v13 = vld [vmem:[%s2932_s26 + $0xc8] sm:$0xff]  ;;  %v240_v14 = vld [vmem:[%s2932_s26 + $0xd0] sm:$0xff] }
  0x2d   : > { %221 = vst [vmem:[%s194_s28 + $0x20] sm:$0xff] %v220_v4  ;;  %v242_v15 = vld [vmem:[%s2932_s26 + $0xd8] sm:$0xff] }
  0x2e   : > { %223 = vst [vmem:[%s194_s28 + $0x28] sm:$0xff] %v222_v5 }
  0x2f   : > { %225 = vst [vmem:[%s194_s28 + $0x30] sm:$0xff] %v224_v6 }
  0x30   : > { %227 = vst [vmem:[%s194_s28 + $0x38] sm:$0xff] %v226_v7 }
  0x31   : > { %229 = vst [vmem:[%s194_s28 + $0x40] sm:$0xff] %v228_v8 }
  0x32   : > { %231 = vst [vmem:[%s194_s28 + $0x48] sm:$0xff] %v230_v9 }
  0x33   : > { %233 = vst [vmem:[%s194_s28 + $0x50] sm:$0xff] %v232_v10 }
  0x34   : > { %235 = vst [vmem:[%s194_s28 + $0x58] sm:$0xff] %v234_v11 }
  0x35   : > { %237 = vst [vmem:[%s194_s28 + $0x60] sm:$0xff] %v236_v12 }
  0x36   : > { %239 = vst [vmem:[%s194_s28 + $0x68] sm:$0xff] %v238_v13 }
  0x37   : > { %241 = vst [vmem:[%s194_s28 + $0x70] sm:$0xff] %v240_v14 }
  0x38   : > { %243 = vst [vmem:[%s194_s28 + $0x78] sm:$0xff] %v242_v15 }
  0x39 PF: > { %p2190_p0 = scmp.ge.s32.totalorder %s2807_s21, 1  ;;  %p248_p1 = scmp.lt.s32.totalorder %s2807_s21, 5 }
  0x3b   : > { %p249_p2 = pnand %p2190_p0, %p248_p1 }
  0x3d   : > { %252 = sbr.rel (%p249_p2) target bundleno = 950 (0x3b6), region = 51 }
  0x42   : > { %s255_s5 = sand.u32 1, %s2783_s15   ;;  %s4434_s9 = sand.u32 1, %s2775_s13  }
  0x43   : > { %s2191_s10 = sshll.u32 %s255_s5, 7  ;;  %s2192_s11 = sshll.u32 %s4434_s9, 6 }
  0x44   : > { %s2193_s22 = sshll.u32 %s2791_s17, 6  ;;  %p297_p3 = scmp.lt.s32.totalorder %s2795_s18, 1 }
  0x45   : > { %p299_p4 = scmp.lt.s32.totalorder %s2193_s22, 127  ;;  %s2969_s9 = scalar_lea.vmem [#allocation5], %s2191_s10 }
  0x46   : > { %s298_s23 = scalar_select %p297_p3, %s2795_s18, 1 }
  0x47   : > { %s4854_s22 = smov (!%p299_p4, %s2193_s22), 127  ;;  %s2971_s20 = scalar_lea.vmem [#allocation6], %s2192_s11 }
  0x48   : > { %s2194_s27 = sshll.u32 %s298_s23, 7  ;;  %s2345_s4 = smul.u32 80, %s298_s23 }
  0x49   : > { %s302_s29 = sadd.s32 %s2194_s27, %s4854_s22  ;;  %p2197_p5 = scmp.ne.s32.totalorder %s2791_s17, 0 }
  0x4a   : > { %s2195_s26 = sshll.u32 %s302_s29, 3  ;;  %s2962_s25 = scalar_lea.vmem %s4429_s1, %s2345_s4 }
  0x4b   : > { %s2967_s5 = scalar_lea.vmem %s4428_s0, %s2195_s26  ;;  %321 = sbr.rel (%p2197_p5) target bundleno = 91 (0x5b), region = 59 }
  0x50   : > { %v322_v16 = vlaneseq  ;;  %v2809_v17 = vmov 0.0   ;;  %v2810_v18 = vmov -inf  }
  0x51   : > { %328 = vst [vmem:[#allocation4 + $0x30] sm:$0xff] %v2809_v17 }
  0x52   : > { %vm324_vm0 = vcmp.lt.s32.totalorder %v322_v16, 256  ;;  %329 = vst [vmem:[#allocation4] sm:$0xff] %v2809_v17 }
  0x53   : > { %326 = vst.msk [vmem:[#allocation2] sm:$0x3] %vm324_vm0, %v2810_v18 }
  0x54   : > { %327 = vst.msk [vmem:[#allocation3] sm:$0x3] %vm324_vm0, %v2809_v17 }
  0x55   : > { %330 = vst [vmem:[#allocation4 + $0x18] sm:$0xff] %v2809_v17 }
  0x56   : > { %331 = vst [vmem:[#allocation4 + $0x10] sm:$0xff] %v2809_v17 }
  0x57   : > { %332 = vst [vmem:[#allocation4 + $0x8] sm:$0xff] %v2809_v17 }
  0x58   : > { %333 = vst [vmem:[#allocation4 + $0x20] sm:$0xff] %v2809_v17 }
  0x59   : > { %334 = vst [vmem:[#allocation4 + $0x28] sm:$0xff] %v2809_v17 }
  0x5a   : > { %335 = vst [vmem:[#allocation4 + $0x38] sm:$0xff] %v2809_v17 }
  0x5b PF: > { %v408_v19 = vld [vmem:[%s2962_s25 + $0x40] sm:$0x1]  ;;  %vm603_vm1 = vcmask 1040384   ;;  %v409_v20 = vld [vmem:[%s2962_s25 + $0x48] sm:$0x1]  ;;  %v406_v21 = vld [vmem:[%s2962_s25 + $0x30] sm:$0xff] }
  0x5c   : > { %2198 = vmatpush.msk.msra.mxu0 %vm603_vm1, %v408_v19  ;;  %2263 = vmatpush.msk.msra.mxu1 %vm603_vm1, %v409_v20  ;;  %v407_v22 = vld [vmem:[%s2962_s25 + $0x38] sm:$0xff]  ;;  %v404_v23 = vld [vmem:[%s2962_s25 + $0x20] sm:$0xff]  ;;  %v405_v24 = vld [vmem:[%s2962_s25 + $0x28] sm:$0xff]  ;;  %vm410_vm2 = vcmask 269312   ;;  %p2328_p6 = scmp.ne.s32.totalorder %s2791_s17, 1 }
  0x5d   : > { %2340 = vmatpush.msk.msra.mxu3 %vm603_vm1, %v409_v20  ;;  %2335 = vmatpush.msk.msra.mxu2 %vm603_vm1, %v408_v19  ;;  %v402_v25 = vld [vmem:[%s2962_s25 + $0x10] sm:$0xff]  ;;  %v403_v26 = vld [vmem:[%s2962_s25 + $0x18] sm:$0xff]  ;;  %v400_v27 = vld [vmem:[%s2962_s25] sm:$0xff] }
  0x5e   : > { %622 = vmatpush.msra.mxu0 %v406_v21  ;;  %831 = vmatpush.msra.mxu1 %v407_v22  ;;  %v401_v28 = vld [vmem:[%s2962_s25 + $0x8] sm:$0xff]  ;;  %v336_v29 = vld [vmem:[%s2967_s5] sm:$0xff]  ;;  %v378_v33 = vld [vmem:[%s2967_s5 + $0x150] sm:$0xff] }
  0x5f   : > { %2341 = vmatpush.msra.mxu3 %v407_v22  ;;  %2336 = vmatpush.msra.mxu2 %v406_v21  ;;  %v2990_v30 = vld [vmem:[%s2967_s5 + $0x140] sm:$0xff]  ;;  %v377_v31 = vld [vmem:[%s2967_s5 + $0x148] sm:$0xff]  ;;  %v338_v34 = vld [vmem:[%s2967_s5 + $0x10] sm:$0xff] }
  0x60   : > { %623 = vmatpush.msra.mxu0 %v404_v23  ;;  %832 = vmatpush.msra.mxu1 %v405_v24  ;;  %v337_v32 = vld [vmem:[%s2967_s5 + $0x8] sm:$0xff]  ;;  %v379_v35 = vld [vmem:[%s2967_s5 + $0x158] sm:$0xff]  ;;  %v380_v37 = vld [vmem:[%s2967_s5 + $0x160] sm:$0xff] }
  0x61   : > { %2342 = vmatpush.msra.mxu3 %v405_v24  ;;  %2337 = vmatpush.msra.mxu2 %v404_v23  ;;  %v339_v36 = vld [vmem:[%s2967_s5 + $0x18] sm:$0xff]  ;;  %v340_v38 = vld [vmem:[%s2967_s5 + $0x20] sm:$0xff]  ;;  %v381_v39 = vld [vmem:[%s2967_s5 + $0x168] sm:$0xff] }
  0x62   : > { %624 = vmatpush.msra.mxu0 %v402_v25  ;;  %833 = vmatpush.msra.mxu1 %v403_v26  ;;  %v341_v40 = vld [vmem:[%s2967_s5 + $0x28] sm:$0xff]  ;;  %v382_v41 = vld [vmem:[%s2967_s5 + $0x170] sm:$0xff]  ;;  %v383_v43 = vld [vmem:[%s2967_s5 + $0x178] sm:$0xff] }
  0x63   : > { %2343 = vmatpush.msra.mxu3 %v403_v26  ;;  %2338 = vmatpush.msra.mxu2 %v402_v25  ;;  %v342_v42 = vld [vmem:[%s2967_s5 + $0x30] sm:$0xff]  ;;  %v343_v44 = vld [vmem:[%s2967_s5 + $0x38] sm:$0xff]  ;;  %v384_v45 = vld [vmem:[%s2967_s5 + $0x180] sm:$0xff] }
  0x64   : > { %625 = vmatpush.msra.mxu0 %v400_v27  ;;  %834 = vmatpush.msra.mxu1 %v401_v28  ;;  %v344_v46 = vld [vmem:[%s2967_s5 + $0x40] sm:$0xff]  ;;  %v385_v47 = vld [vmem:[%s2967_s5 + $0x188] sm:$0xff]  ;;  %v386_v49 = vld [vmem:[%s2967_s5 + $0x190] sm:$0xff] }
  0x65   : > { %2199 = vmatmul.msk.f32.vlgmr.msra.gmra.mxu0 %vm410_vm2, %v336_v29  ;;  %2264 = vmatmul.msk.f32.vlgmr.msra.gmra.mxu1 %vm410_vm2, %v336_v29  ;;  %v345_v48 = vld [vmem:[%s2967_s5 + $0x48] sm:$0xff]  ;;  %v346_v50 = vld [vmem:[%s2967_s5 + $0x50] sm:$0xff]  ;;  %v387_v51 = vld [vmem:[%s2967_s5 + $0x198] sm:$0xff] }
  0x66   : > { %2344 = vmatpush.msra.mxu3 %v401_v28  ;;  %2339 = vmatpush.msra.mxu2 %v400_v27  ;;  %v347_v52 = vld [vmem:[%s2967_s5 + $0x58] sm:$0xff]  ;;  %v388_v53 = vld [vmem:[%s2967_s5 + $0x1a0] sm:$0xff]  ;;  %v389_v55 = vld [vmem:[%s2967_s5 + $0x1a8] sm:$0xff] }
  0x67   : > { %2304 = vmatmul.msk.f32.vlgmr.msra.gmra.mxu3 %vm410_vm2, %v2990_v30  ;;  %2240 = vmatmul.msk.f32.vlgmr.msra.gmra.mxu2 %vm410_vm2, %v377_v31  ;;  %v348_v54 = vld [vmem:[%s2967_s5 + $0x60] sm:$0xff]  ;;  %v349_v56 = vld [vmem:[%s2967_s5 + $0x68] sm:$0xff]  ;;  %v390_v57 = vld [vmem:[%s2967_s5 + $0x1b0] sm:$0xff] }
  0x68   : > { %v350_v58 = vld [vmem:[%s2967_s5 + $0x70] sm:$0xff]  ;;  %v391_v59 = vld [vmem:[%s2967_s5 + $0x1b8] sm:$0xff]  ;;  %v392_v61 = vld [vmem:[%s2967_s5 + $0x1c0] sm:$0xff] }
  0x69   : > { %v351_v60 = vld [vmem:[%s2967_s5 + $0x78] sm:$0xff]  ;;  %v352_v0 = vld [vmem:[%s2967_s5 + $0x80] sm:$0xff]  ;;  %v393_v1 = vld [vmem:[%s2967_s5 + $0x1c8] sm:$0xff] }
  0x6a   : > { %v353_v4 = vld [vmem:[%s2967_s5 + $0x88] sm:$0xff]  ;;  %v394_v5 = vld [vmem:[%s2967_s5 + $0x1d0] sm:$0xff]  ;;  %v395_v9 = vld [vmem:[%s2967_s5 + $0x1d8] sm:$0xff] }
  0x6b   : > { %v354_v8 = vld [vmem:[%s2967_s5 + $0x90] sm:$0xff]  ;;  %v355_v12 = vld [vmem:[%s2967_s5 + $0x98] sm:$0xff]  ;;  %v356_v15 = vld [vmem:[%s2967_s5 + $0xa0] sm:$0xff] }
  0x6c   : > { %v357_v18 = vld [vmem:[%s2967_s5 + $0xa8] sm:$0xff]  ;;  %v358_v21 = vld [vmem:[%s2967_s5 + $0xb0] sm:$0xff]  ;;  %v359_v24 = vld [vmem:[%s2967_s5 + $0xb8] sm:$0xff] }
  0x6d   : > { %2200 = vmatmul.msk.f32.gmra.mxu0 %vm410_vm2, %v337_v32  ;;  %2265 = vmatmul.msk.f32.gmra.mxu1 %vm410_vm2, %v337_v32  ;;  %v360_v27 = vld [vmem:[%s2967_s5 + $0xc0] sm:$0xff] }
  0x6f   : > { %2305 = vmatmul.msk.f32.gmra.mxu3 %vm410_vm2, %v377_v31  ;;  %2241 = vmatmul.msk.f32.gmra.mxu2 %vm410_vm2, %v378_v33  ;;  %v361_v31 = vld [vmem:[%s2967_s5 + $0xc8] sm:$0xff] }
  0x75   : > { %2201 = vmatmul.msk.f32.gmra.mxu0 %vm410_vm2, %v338_v34  ;;  %2266 = vmatmul.msk.f32.gmra.mxu1 %vm410_vm2, %v338_v34  ;;  %v362_v34 = vld [vmem:[%s2967_s5 + $0xd0] sm:$0xff] }
  0x77   : > { %2306 = vmatmul.msk.f32.gmra.mxu3 %vm410_vm2, %v378_v33  ;;  %2242 = vmatmul.msk.f32.gmra.mxu2 %vm410_vm2, %v379_v35 }
  0x7d   : > { %2202 = vmatmul.msk.f32.gmra.mxu0 %vm410_vm2, %v339_v36  ;;  %2267 = vmatmul.msk.f32.gmra.mxu1 %vm410_vm2, %v339_v36 }
  0x7f   : > { %2307 = vmatmul.msk.f32.gmra.mxu3 %vm410_vm2, %v379_v35  ;;  %2243 = vmatmul.msk.f32.gmra.mxu2 %vm410_vm2, %v380_v37 }
  0x85   : > { %2203 = vmatmul.msk.f32.gmra.mxu0 %vm410_vm2, %v340_v38  ;;  %2268 = vmatmul.msk.f32.gmra.mxu1 %vm410_vm2, %v340_v38 }
  0x87   : > { %2308 = vmatmul.msk.f32.gmra.mxu3 %vm410_vm2, %v380_v37  ;;  %2244 = vmatmul.msk.f32.gmra.mxu2 %vm410_vm2, %v381_v39  ;;  %v363_v37 = vld [vmem:[%s2967_s5 + $0xd8] sm:$0xff] }
  0x8d   : > { %2204 = vmatmul.msk.f32.gmra.mxu0 %vm410_vm2, %v341_v40  ;;  %2269 = vmatmul.msk.f32.gmra.mxu1 %vm410_vm2, %v341_v40 }
  0x8f   : > { %2309 = vmatmul.msk.f32.gmra.mxu3 %vm410_vm2, %v381_v39  ;;  %2245 = vmatmul.msk.f32.gmra.mxu2 %vm410_vm2, %v382_v41 }
  0x95   : > { %2205 = vmatmul.msk.f32.gmra.mxu0 %vm410_vm2, %v342_v42  ;;  %2270 = vmatmul.msk.f32.gmra.mxu1 %vm410_vm2, %v342_v42 }
  0x97   : > { %2310 = vmatmul.msk.f32.gmra.mxu3 %vm410_vm2, %v382_v41  ;;  %2246 = vmatmul.msk.f32.gmra.mxu2 %vm410_vm2, %v383_v43  ;;  %v364_v41 = vld [vmem:[%s2967_s5 + $0xe0] sm:$0xff] }
  0x9d   : > { %2206 = vmatmul.msk.f32.gmra.mxu0 %vm410_vm2, %v343_v44  ;;  %2271 = vmatmul.msk.f32.gmra.mxu1 %vm410_vm2, %v343_v44  ;;  %v365_v44 = vld [vmem:[%s2967_s5 + $0xe8] sm:$0xff] }
  0x9f   : > { %2311 = vmatmul.msk.f32.gmra.mxu3 %vm410_vm2, %v383_v43  ;;  %2247 = vmatmul.msk.f32.gmra.mxu2 %vm410_vm2, %v384_v45 }
  0xa5   : > { %2207 = vmatmul.msk.f32.gmra.mxu0 %vm410_vm2, %v344_v46  ;;  %2272 = vmatmul.msk.f32.gmra.mxu1 %vm410_vm2, %v344_v46 }
  0xa7   : > { %2312 = vmatmul.msk.f32.gmra.mxu3 %vm410_vm2, %v384_v45  ;;  %2248 = vmatmul.msk.f32.gmra.mxu2 %vm410_vm2, %v385_v47 }
  0xad   : > { %2208 = vmatmul.msk.f32.gmra.mxu0 %vm410_vm2, %v345_v48  ;;  %2273 = vmatmul.msk.f32.gmra.mxu1 %vm410_vm2, %v345_v48 }
  0xaf   : > { %2313 = vmatmul.msk.f32.gmra.mxu3 %vm410_vm2, %v385_v47  ;;  %2249 = vmatmul.msk.f32.gmra.mxu2 %vm410_vm2, %v386_v49 }
  0xb5   : > { %2209 = vmatmul.msk.f32.gmra.mxu0 %vm410_vm2, %v346_v50  ;;  %2274 = vmatmul.msk.f32.gmra.mxu1 %vm410_vm2, %v346_v50 }
  0xb7   : > { %2314 = vmatmul.msk.f32.gmra.mxu3 %vm410_vm2, %v386_v49  ;;  %2250 = vmatmul.msk.f32.gmra.mxu2 %vm410_vm2, %v387_v51  ;;  %v366_v49 = vld [vmem:[%s2967_s5 + $0xf0] sm:$0xff] }
  0xbd   : > { %2210 = vmatmul.msk.f32.gmra.mxu0 %vm410_vm2, %v347_v52  ;;  %2275 = vmatmul.msk.f32.gmra.mxu1 %vm410_vm2, %v347_v52 }
  0xbf   : > { %2315 = vmatmul.msk.f32.gmra.mxu3 %vm410_vm2, %v387_v51  ;;  %2251 = vmatmul.msk.f32.gmra.mxu2 %vm410_vm2, %v388_v53 }
  0xc5   : > { %2211 = vmatmul.msk.f32.gmra.mxu0 %vm410_vm2, %v348_v54  ;;  %2276 = vmatmul.msk.f32.gmra.mxu1 %vm410_vm2, %v348_v54  ;;  %v367_v54 = vld [vmem:[%s2967_s5 + $0xf8] sm:$0xff] }
  0xc7   : > { %2316 = vmatmul.msk.f32.gmra.mxu3 %vm410_vm2, %v388_v53  ;;  %2252 = vmatmul.msk.f32.gmra.mxu2 %vm410_vm2, %v389_v55 }
  0xcd   : > { %2212 = vmatmul.msk.f32.gmra.mxu0 %vm410_vm2, %v349_v56  ;;  %2277 = vmatmul.msk.f32.gmra.mxu1 %vm410_vm2, %v349_v56 }
  0xcf   : > { %2317 = vmatmul.msk.f32.gmra.mxu3 %vm410_vm2, %v389_v55  ;;  %2253 = vmatmul.msk.f32.gmra.mxu2 %vm410_vm2, %v390_v57 }
  0xd5   : > { %2213 = vmatmul.msk.f32.gmra.mxu0 %vm410_vm2, %v350_v58  ;;  %2278 = vmatmul.msk.f32.gmra.mxu1 %vm410_vm2, %v350_v58 }
  0xd7   : > { %2318 = vmatmul.msk.f32.gmra.mxu3 %vm410_vm2, %v390_v57  ;;  %2254 = vmatmul.msk.f32.gmra.mxu2 %vm410_vm2, %v391_v59 }
  0xdd   : > { %2214 = vmatmul.msk.f32.gmra.mxu0 %vm410_vm2, %v351_v60  ;;  %2279 = vmatmul.msk.f32.gmra.mxu1 %vm410_vm2, %v351_v60  ;;  %v396_v60 = vld [vmem:[%s2967_s5 + $0x1e0] sm:$0xff] }
  0xdf   : > { %2319 = vmatmul.msk.f32.gmra.mxu3 %vm410_vm2, %v391_v59  ;;  %2255 = vmatmul.msk.f32.gmra.mxu2 %vm410_vm2, %v392_v61  ;;  %v368_v59 = vld [vmem:[%s2967_s5 + $0x100] sm:$0xff] }
  0xe2   : > { %v3088_v62 = vpop.f32.mrf.mxu0  ;;  %v3090_v63 = vpop.f32.mrf.mxu1 }
  0xe3   : > { %4565 = vst [vmem:[#allocation12_spill] sm:$0xff] %v3088_v62 }
  0xe4   : > { %4566 = vst [vmem:[#allocation13_spill] sm:$0xff] %v3090_v63 }
  0xe5   : > { %2215 = vmatmul.msk.f32.gmra.mxu0 %vm410_vm2, %v352_v0  ;;  %2280 = vmatmul.msk.f32.gmra.mxu1 %vm410_vm2, %v352_v0 }
  0xe7   : > { %2320 = vmatmul.msk.f32.gmra.mxu3 %vm410_vm2, %v392_v61  ;;  %2256 = vmatmul.msk.f32.gmra.mxu2 %vm410_vm2, %v393_v1 }
  0xea   : > { %v3098_v2 = vpop.f32.mrf.mxu0  ;;  %v3100_v3 = vpop.f32.mrf.mxu1 }
  0xeb   : > { %4567 = vst [vmem:[#allocation14_spill] sm:$0xff] %v3100_v3  ;;  %v3182_v38 = vpop.f32.mrf.mxu3  ;;  %v3200_v46 = vpop.f32.mrf.mxu2 }
  0xec   : > { %4580 = vst [vmem:[#allocation27_spill] sm:$0xff] %v3182_v38 }
  0xed   : > { %2216 = vmatmul.msk.f32.gmra.mxu0 %vm410_vm2, %v353_v4  ;;  %2281 = vmatmul.msk.f32.gmra.mxu1 %vm410_vm2, %v353_v4  ;;  %4585 = vst [vmem:[#allocation32_spill] sm:$0xff] %v3200_v46  ;;  %v369_v4 = vld [vmem:[%s2967_s5 + $0x108] sm:$0xff] }
  0xef   : > { %2321 = vmatmul.msk.f32.gmra.mxu3 %vm410_vm2, %v393_v1  ;;  %2257 = vmatmul.msk.f32.gmra.mxu2 %vm410_vm2, %v394_v5 }
  0xf2   : > { %v3108_v6 = vpop.f32.mrf.mxu0  ;;  %v3110_v7 = vpop.f32.mrf.mxu1 }
  0xf3   : > { %4568 = vst [vmem:[#allocation15_spill] sm:$0xff] %v3110_v7  ;;  %v3196_v45 = vpop.f32.mrf.mxu3  ;;  %v3211_v51 = vpop.f32.mrf.mxu2 }
  0xf4   : > { %4584 = vst [vmem:[#allocation31_spill] sm:$0xff] %v3196_v45 }
  0xf5   : > { %2217 = vmatmul.msk.f32.gmra.mxu0 %vm410_vm2, %v354_v8  ;;  %2282 = vmatmul.msk.f32.gmra.mxu1 %vm410_vm2, %v354_v8  ;;  %4589 = vst [vmem:[#allocation36_spill] sm:$0xff] %v3211_v51  ;;  %v397_v8 = vld [vmem:[%s2967_s5 + $0x1e8] sm:$0xff] }
  0xf7   : > { %2322 = vmatmul.msk.f32.gmra.mxu3 %vm410_vm2, %v394_v5  ;;  %2258 = vmatmul.msk.f32.gmra.mxu2 %vm410_vm2, %v395_v9 }
  0xfa   : > { %v3118_v10 = vpop.f32.mrf.mxu0  ;;  %v3120_v11 = vpop.f32.mrf.mxu1 }
  0xfb   : > { %4569 = vst [vmem:[#allocation16_spill] sm:$0xff] %v3120_v11  ;;  %v3209_v50 = vpop.f32.mrf.mxu3  ;;  %v3222_v56 = vpop.f32.mrf.mxu2 }
  0xfc   : > { %4588 = vst [vmem:[#allocation35_spill] sm:$0xff] %v3209_v50 }
  0xfd   : > { %2218 = vmatmul.msk.f32.gmra.mxu0 %vm410_vm2, %v355_v12  ;;  %2283 = vmatmul.msk.f32.gmra.mxu1 %vm410_vm2, %v355_v12  ;;  %4593 = vst [vmem:[#allocation40_spill] sm:$0xff] %v3222_v56 }
  0xff   : > { %2323 = vmatmul.msk.f32.gmra.mxu3 %vm410_vm2, %v395_v9  ;;  %2259 = vmatmul.msk.f32.gmra.mxu2 %vm410_vm2, %v396_v60 }
 0x102   : > { %v3126_v13 = vpop.f32.mrf.mxu0  ;;  %v3128_v14 = vpop.f32.mrf.mxu1 }
 0x103   : > { %4570 = vst [vmem:[#allocation17_spill] sm:$0xff] %v3128_v14  ;;  %v3220_v55 = vpop.f32.mrf.mxu3  ;;  %v3241_v5 = vpop.f32.mrf.mxu2 }
 0x104   : > { %4592 = vst [vmem:[#allocation39_spill] sm:$0xff] %v3220_v55 }
 0x105   : > { %2219 = vmatmul.msk.f32.gmra.mxu0 %vm410_vm2, %v356_v15  ;;  %2284 = vmatmul.msk.f32.gmra.mxu1 %vm410_vm2, %v356_v15  ;;  %4599 = vst [vmem:[#allocation46_spill] sm:$0xff] %v3241_v5  ;;  %v370_v15 = vld [vmem:[%s2967_s5 + $0x110] sm:$0xff] }
 0x107   : > { %2324 = vmatmul.msk.f32.gmra.mxu3 %vm410_vm2, %v396_v60  ;;  %2260 = vmatmul.msk.f32.gmra.mxu2 %vm410_vm2, %v397_v8 }
 0x10a   : > { %v3133_v16 = vpop.f32.mrf.mxu0  ;;  %v3135_v17 = vpop.f32.mrf.mxu1 }
 0x10b   : > { %4571 = vst [vmem:[#allocation18_spill] sm:$0xff] %v3135_v17  ;;  %v3234_v61 = vpop.f32.mrf.mxu3 }
 0x10c   : > { %4596 = vst [vmem:[#allocation43_spill] sm:$0xff] %v3234_v61 }
 0x10d   : > { %2220 = vmatmul.msk.f32.gmra.mxu0 %vm410_vm2, %v357_v18  ;;  %2285 = vmatmul.msk.f32.gmra.mxu1 %vm410_vm2, %v357_v18 }
 0x10f   : > { %2325 = vmatmul.msk.f32.gmra.mxu3 %vm410_vm2, %v397_v8 }
 0x112   : > { %v3140_v19 = vpop.f32.mrf.mxu0  ;;  %v3142_v20 = vpop.f32.mrf.mxu1 }
 0x113   : > { %4572 = vst [vmem:[#allocation19_spill] sm:$0xff] %v3142_v20  ;;  %v3253_v18 = vpop.f32.mrf.mxu3 }
 0x114   : > { %4602 = vst [vmem:[#allocation49_spill] sm:$0xff] %v3253_v18 }
 0x115   : > { %2221 = vmatmul.msk.f32.gmra.mxu0 %vm410_vm2, %v358_v21  ;;  %2286 = vmatmul.msk.f32.gmra.mxu1 %vm410_vm2, %v358_v21  ;;  %v3257_v21 = vpop.f32.mrf.mxu2 }
 0x116   : > { %4603 = vst [vmem:[#allocation50_spill] sm:$0xff] %v3257_v21 }
 0x11a   : > { %v3147_v22 = vpop.f32.mrf.mxu0  ;;  %v3149_v23 = vpop.f32.mrf.mxu1 }
 0x11b   : > { %4573 = vst [vmem:[#allocation20_spill] sm:$0xff] %v3149_v23 }
 0x11d   : > { %2222 = vmatmul.msk.f32.gmra.mxu0 %vm410_vm2, %v359_v24  ;;  %2287 = vmatmul.msk.f32.gmra.mxu1 %vm410_vm2, %v359_v24  ;;  %v398_v24 = vld [vmem:[%s2967_s5 + $0x1f0] sm:$0xff] }
 0x11e   : > { %2261 = vmatmul.msk.f32.gmra.mxu2 %vm410_vm2, %v398_v24  ;;  %2326 = vmatmul.msk.f32.gmra.mxu3 %vm410_vm2, %v398_v24  ;;  %v373_v24 = vld [vmem:[%s2967_s5 + $0x128] sm:$0xff] }
 0x122   : > { %v3154_v25 = vpop.f32.mrf.mxu0  ;;  %v3156_v26 = vpop.f32.mrf.mxu1 }
 0x123   : > { %4574 = vst [vmem:[#allocation21_spill] sm:$0xff] %v3154_v25 }
 0x124   : > { %4575 = vst [vmem:[#allocation22_spill] sm:$0xff] %v3156_v26 }
 0x125   : > { %2223 = vmatmul.msk.f32.gmra.mxu0 %vm410_vm2, %v360_v27  ;;  %2288 = vmatmul.msk.f32.gmra.mxu1 %vm410_vm2, %v360_v27 }
 0x12a   : > { %v3161_v28 = vpop.f32.mrf.mxu0  ;;  %v3163_v29 = vpop.f32.mrf.mxu1 }
 0x12b   : > { %4576 = vst [vmem:[#allocation23_spill] sm:$0xff] %v3163_v29 }
 0x12d   : > { %2224 = vmatmul.msk.f32.gmra.mxu0 %vm410_vm2, %v361_v31  ;;  %2289 = vmatmul.msk.f32.gmra.mxu1 %vm410_vm2, %v361_v31 }
 0x132   : > { %v3168_v32 = vpop.f32.mrf.mxu0  ;;  %v3170_v33 = vpop.f32.mrf.mxu1 }
 0x133   : > { %4577 = vst [vmem:[#allocation24_spill] sm:$0xff] %v3168_v32 }
 0x134   : > { %4578 = vst [vmem:[#allocation25_spill] sm:$0xff] %v3170_v33 }
 0x135   : > { %2225 = vmatmul.msk.f32.gmra.mxu0 %vm410_vm2, %v362_v34  ;;  %2290 = vmatmul.msk.f32.gmra.mxu1 %vm410_vm2, %v362_v34  ;;  %v371_v34 = vld [vmem:[%s2967_s5 + $0x118] sm:$0xff] }
 0x13a   : > { %v3175_v35 = vpop.f32.mrf.mxu0  ;;  %v3177_v36 = vpop.f32.mrf.mxu1 }
 0x13b   : > { %4579 = vst [vmem:[#allocation26_spill] sm:$0xff] %v3177_v36 }
 0x13d   : > { %2226 = vmatmul.msk.f32.gmra.mxu0 %vm410_vm2, %v363_v37  ;;  %2291 = vmatmul.msk.f32.gmra.mxu1 %vm410_vm2, %v363_v37  ;;  %v3269_v37 = vpop.f32.mrf.mxu3 }
 0x13e   : > { %4606 = vst [vmem:[#allocation53_spill] sm:$0xff] %v3269_v37 }
 0x142   : > { %v3184_v39 = vpop.f32.mrf.mxu0  ;;  %v3186_v40 = vpop.f32.mrf.mxu1 }
 0x143   : > { %4581 = vst [vmem:[#allocation28_spill] sm:$0xff] %v3184_v39 }
 0x144   : > { %4582 = vst [vmem:[#allocation29_spill] sm:$0xff] %v3186_v40 }
 0x145   : > { %2227 = vmatmul.msk.f32.gmra.mxu0 %vm410_vm2, %v364_v41  ;;  %2292 = vmatmul.msk.f32.gmra.mxu1 %vm410_vm2, %v364_v41  ;;  %v3271_v41 = vpop.f32.mrf.mxu2  ;;  %v3283_v60 = vpop.f32.mrf.mxu3 }
 0x146   : > { %4607 = vst [vmem:[#allocation54_spill] sm:$0xff] %v3271_v41 }
 0x147   : > { %4610 = vst [vmem:[#allocation57_spill] sm:$0xff] %v3283_v60 }
 0x14a   : > { %v3191_v42 = vpop.f32.mrf.mxu0  ;;  %v3193_v43 = vpop.f32.mrf.mxu1 }
 0x14b   : > { %4583 = vst [vmem:[#allocation30_spill] sm:$0xff] %v3193_v43 }
 0x14d   : > { %2228 = vmatmul.msk.f32.gmra.mxu0 %vm410_vm2, %v365_v44  ;;  %2293 = vmatmul.msk.f32.gmra.mxu1 %vm410_vm2, %v365_v44  ;;  %v399_v44 = vld [vmem:[%s2967_s5 + $0x1f8] sm:$0xff] }
 0x14e   : > { %2262 = vmatmul.msk.f32.gmra.mxu2 %vm410_vm2, %v399_v44  ;;  %2327 = vmatmul.msk.f32.gmra.mxu3 %vm410_vm2, %v399_v44 }
 0x152   : > { %v3202_v47 = vpop.f32.mrf.mxu0  ;;  %v3204_v48 = vpop.f32.mrf.mxu1 }
 0x153   : > { %4586 = vst [vmem:[#allocation33_spill] sm:$0xff] %v3202_v47 }
 0x154   : > { %4587 = vst [vmem:[#allocation34_spill] sm:$0xff] %v3204_v48 }
 0x155   : > { %2229 = vmatmul.msk.f32.gmra.mxu0 %vm410_vm2, %v366_v49  ;;  %2294 = vmatmul.msk.f32.gmra.mxu1 %vm410_vm2, %v366_v49 }
 0x15a   : > { %v3213_v52 = vpop.f32.mrf.mxu0  ;;  %v3215_v53 = vpop.f32.mrf.mxu1 }
 0x15b   : > { %4590 = vst [vmem:[#allocation37_spill] sm:$0xff] %v3213_v52 }
 0x15c   : > { %4591 = vst [vmem:[#allocation38_spill] sm:$0xff] %v3215_v53 }
 0x15d   : > { %2230 = vmatmul.msk.f32.gmra.mxu0 %vm410_vm2, %v367_v54  ;;  %2295 = vmatmul.msk.f32.gmra.mxu1 %vm410_vm2, %v367_v54 }
 0x162   : > { %v3224_v57 = vpop.f32.mrf.mxu0  ;;  %v3226_v58 = vpop.f32.mrf.mxu1 }
 0x163   : > { %4594 = vst [vmem:[#allocation41_spill] sm:$0xff] %v3224_v57 }
 0x164   : > { %4595 = vst [vmem:[#allocation42_spill] sm:$0xff] %v3226_v58 }
 0x165   : > { %2231 = vmatmul.msk.f32.gmra.mxu0 %vm410_vm2, %v368_v59  ;;  %2296 = vmatmul.msk.f32.gmra.mxu1 %vm410_vm2, %v368_v59  ;;  %v372_v59 = vld [vmem:[%s2967_s5 + $0x120] sm:$0xff] }
 0x16a   : > { %v3236_v0 = vpop.f32.mrf.mxu0  ;;  %v3238_v1 = vpop.f32.mrf.mxu1 }
 0x16b   : > { %4597 = vst [vmem:[#allocation44_spill] sm:$0xff] %v3236_v0 }
 0x16c   : > { %4598 = vst [vmem:[#allocation45_spill] sm:$0xff] %v3238_v1 }
 0x16d   : > { %2232 = vmatmul.msk.f32.gmra.mxu0 %vm410_vm2, %v369_v4  ;;  %2297 = vmatmul.msk.f32.gmra.mxu1 %vm410_vm2, %v369_v4  ;;  %v3285_v4 = vpop.f32.mrf.mxu2 }
 0x16e   : > { %4611 = vst [vmem:[#allocation58_spill] sm:$0xff] %v3285_v4 }
 0x172   : > { %v3248_v9 = vpop.f32.mrf.mxu0  ;;  %v3250_v12 = vpop.f32.mrf.mxu1 }
 0x173   : > { %4600 = vst [vmem:[#allocation47_spill] sm:$0xff] %v3248_v9 }
 0x174   : > { %4601 = vst [vmem:[#allocation48_spill] sm:$0xff] %v3250_v12 }
 0x175   : > { %2233 = vmatmul.msk.f32.gmra.mxu0 %vm410_vm2, %v370_v15  ;;  %2298 = vmatmul.msk.f32.gmra.mxu1 %vm410_vm2, %v370_v15  ;;  %v3301_v9 = vpop.f32.mrf.mxu2 }
 0x176   : > { %4617 = vst [vmem:[#allocation64_spill] sm:$0xff] %v3301_v9 }
 0x17a   : > { %v3262_v27 = vpop.f32.mrf.mxu0  ;;  %v3264_v31 = vpop.f32.mrf.mxu1 }
 0x17b   : > { %4604 = vst [vmem:[#allocation51_spill] sm:$0xff] %v3262_v27 }
 0x17c   : > { %4605 = vst [vmem:[#allocation52_spill] sm:$0xff] %v3264_v31 }
 0x17d   : > { %2234 = vmatmul.msk.f32.gmra.mxu0 %vm410_vm2, %v371_v34  ;;  %2299 = vmatmul.msk.f32.gmra.mxu1 %vm410_vm2, %v371_v34  ;;  %v3294_v34 = vpop.f32.mrf.mxu3 }
 0x17e   : > { %4614 = vst [vmem:[#allocation61_spill] sm:$0xff] %v3294_v34 }
 0x182   : > { %v3276_v49 = vpop.f32.mrf.mxu0  ;;  %v3278_v54 = vpop.f32.mrf.mxu1 }
 0x183   : > { %4608 = vst [vmem:[#allocation55_spill] sm:$0xff] %v3276_v49 }
 0x184   : > { %4609 = vst [vmem:[#allocation56_spill] sm:$0xff] %v3278_v54 }
 0x185   : > { %2235 = vmatmul.msk.f32.gmra.mxu0 %vm410_vm2, %v372_v59  ;;  %2300 = vmatmul.msk.f32.gmra.mxu1 %vm410_vm2, %v372_v59  ;;  %v374_v59 = vld [vmem:[%s2967_s5 + $0x130] sm:$0xff]  ;;  %v3310_v47 = vpop.f32.mrf.mxu3 }
 0x186   : > { %4620 = vst [vmem:[#allocation67_spill] sm:$0xff] %v3310_v47 }
 0x18a   : > { %v3287_v8 = vpop.f32.mrf.mxu0  ;;  %v3289_v15 = vpop.f32.mrf.mxu1 }
 0x18b   : > { %4612 = vst [vmem:[#allocation59_spill] sm:$0xff] %v3287_v8  ;;  %v375_v8 = vld [vmem:[%s2967_s5 + $0x138] sm:$0xff] }
 0x18c   : > { %4613 = vst [vmem:[#allocation60_spill] sm:$0xff] %v3289_v15 }
 0x18d   : > { %2236 = vmatmul.msk.f32.gmra.mxu0 %vm410_vm2, %v373_v24  ;;  %2301 = vmatmul.msk.f32.gmra.mxu1 %vm410_vm2, %v373_v24  ;;  %v3314_v24 = vpop.f32.mrf.mxu2 }
 0x18e   : > { %4621 = vst [vmem:[#allocation68_spill] sm:$0xff] %v3314_v24 }
 0x192   : > { %v3296_v44 = vpop.f32.mrf.mxu0  ;;  %v3298_v49 = vpop.f32.mrf.mxu1 }
 0x193   : > { %4615 = vst [vmem:[#allocation62_spill] sm:$0xff] %v3296_v44 }
 0x194   : > { %4616 = vst [vmem:[#allocation63_spill] sm:$0xff] %v3298_v49 }
 0x195   : > { %2237 = vmatmul.msk.f32.gmra.mxu0 %vm410_vm2, %v374_v59  ;;  %2302 = vmatmul.msk.f32.gmra.mxu1 %vm410_vm2, %v374_v59  ;;  %v3322_v59 = vpop.f32.mrf.mxu3 }
 0x196   : > { %4624 = vst [vmem:[#allocation71_spill] sm:$0xff] %v3322_v59 }
 0x19a   : > { %v3305_v57 = vpop.f32.mrf.mxu0  ;;  %v3307_v15 = vpop.f32.mrf.mxu1 }
 0x19b   : > { %4618 = vst [vmem:[#allocation65_spill] sm:$0xff] %v3305_v57  ;;  %v3324_v57 = vpop.f32.mrf.mxu2 }
 0x19c   : > { %4619 = vst [vmem:[#allocation66_spill] sm:$0xff] %v3307_v15 }
 0x19d   : > { %2238 = vmatmul.msk.f32.gmra.mxu0 %vm410_vm2, %v375_v8  ;;  %2303 = vmatmul.msk.f32.gmra.mxu1 %vm410_vm2, %v375_v8  ;;  %4625 = vst [vmem:[#allocation72_spill] sm:$0xff] %v3324_v57  ;;  %v3330_v39 = vpop.f32.mrf.mxu3 }
 0x19e   : > { %4628 = vst [vmem:[#allocation75_spill] sm:$0xff] %v3330_v39 }
 0x1a2   : > { %v3316_v44 = vpop.f32.mrf.mxu0  ;;  %v3318_v31 = vpop.f32.mrf.mxu1 }
 0x1a3   : > { %4622 = vst [vmem:[#allocation69_spill] sm:$0xff] %v3316_v44  ;;  %v3332_v8 = vpop.f32.mrf.mxu2 }
 0x1a4   : > { %4623 = vst [vmem:[#allocation70_spill] sm:$0xff] %v3318_v31 }
 0x1a5   : > { %2239 = vmatmul.msk.f32.gmra.mxu0 %vm410_vm2, %v2990_v30  ;;  %4629 = vst [vmem:[#allocation76_spill] sm:$0xff] %v3332_v8  ;;  %v3338_v31 = vpop.f32.mrf.mxu3 }
 0x1a6   : > { %4632 = vst [vmem:[#allocation79_spill] sm:$0xff] %v3338_v31 }
 0x1aa   : > { %v3326_v15 = vpop.f32.mrf.mxu0  ;;  %v3328_v27 = vpop.f32.mrf.mxu1 }
 0x1ab   : > { %4626 = vst [vmem:[#allocation73_spill] sm:$0xff] %v3326_v15  ;;  %v3344_v32 = vpop.f32.mrf.mxu2 }
 0x1ac   : > { %4627 = vst [vmem:[#allocation74_spill] sm:$0xff] %v3328_v27 }
 0x1ad   : > { %4635 = vst [vmem:[#allocation82_spill] sm:$0xff] %v3344_v32  ;;  %v3350_v27 = vpop.f32.mrf.mxu3 }
 0x1ae   : > { %4638 = vst [vmem:[#allocation85_spill] sm:$0xff] %v3350_v27 }
 0x1b2   : > { %v3334_v1 = vpop.f32.mrf.mxu0  ;;  %v3336_v44 = vpop.f32.mrf.mxu1 }
 0x1b3   : > { %4630 = vst [vmem:[#allocation77_spill] sm:$0xff] %v3334_v1  ;;  %v3352_v53 = vpop.f32.mrf.mxu2 }
 0x1b4   : > { %4631 = vst [vmem:[#allocation78_spill] sm:$0xff] %v3336_v44 }
 0x1b5   : > { %4639 = vst [vmem:[#allocation86_spill] sm:$0xff] %v3352_v53  ;;  %v3358_v44 = vpop.f32.mrf.mxu3 }
 0x1b6   : > { %4642 = vst [vmem:[#allocation89_spill] sm:$0xff] %v3358_v44 }
 0x1ba   : > { %v3340_v0 = vpop.f32.mrf.mxu0  ;;  %v3342_v30 = vpop.f32.mrf.mxu1 }
 0x1bb   : > { %4633 = vst [vmem:[#allocation80_spill] sm:$0xff] %v3340_v0  ;;  %v3360_v25 = vpop.f32.mrf.mxu2 }
 0x1bc   : > { %4634 = vst [vmem:[#allocation81_spill] sm:$0xff] %v3342_v30  ;;  %v1136_v30 = vmax.f32 %v3196_v45, %v3182_v38 }
 0x1bd   : > { %4643 = vst [vmem:[#allocation90_spill] sm:$0xff] %v3360_v25  ;;  %v3369_v54 = vpop.f32.mrf.mxu3 }
 0x1be   : > { %4646 = vst [vmem:[#allocation93_spill] sm:$0xff] %v3369_v54 }
 0x1c2   : > { %v3346_v49 = vpop.f32.mrf.mxu0  ;;  %v3348_v15 = vpop.f32.mrf.mxu1 }
 0x1c3   : > { %4636 = vst [vmem:[#allocation83_spill] sm:$0xff] %v3346_v49  ;;  %v3374_v53 = vpop.f32.mrf.mxu2 }
 0x1c4   : > { %4637 = vst [vmem:[#allocation84_spill] sm:$0xff] %v3348_v15  ;;  %v1138_v15 = vmax.f32 %v1136_v30, %v3209_v50 }
 0x1c5   : > { %4647 = vst [vmem:[#allocation94_spill] sm:$0xff] %v3374_v53  ;;  %v3384_v50 = vpop.f32.mrf.mxu3 }
 0x1c6   : > { %4649 = vst [vmem:[#allocation96_spill] sm:$0xff] %v3384_v50 }
 0x1ca   : > { %v3354_v52 = vpop.f32.mrf.mxu0  ;;  %v3356_v1 = vpop.f32.mrf.mxu1 }
 0x1cb   : > { %4640 = vst [vmem:[#allocation87_spill] sm:$0xff] %v3354_v52  ;;  %v1068_v52 = vmax.f32 %v3211_v51, %v3200_v46 }
 0x1cc   : > { %4641 = vst [vmem:[#allocation88_spill] sm:$0xff] %v3356_v1  ;;  %v1140_v1 = vmax.f32 %v1138_v15, %v3220_v55  ;;  %v3390_v15 = vpop.f32.mrf.mxu2 }
 0x1cd   : > { %v1070_v38 = vmax.f32 %v1068_v52, %v3222_v56  ;;  %4651 = vst [vmem:[#allocation98_spill] sm:$0xff] %v3390_v15 }
 0x1ce   : > { %v1142_v45 = vmax.f32 %v1140_v1, %v3234_v61 }
 0x1d0   : > { %v1144_v30 = vmax.f32 %v1142_v45, %v3253_v18  ;;  %v3400_v45 = vpop.f32.mrf.mxu3 }
 0x1d1   : > { %4653 = vst [vmem:[#allocation100_spill] sm:$0xff] %v3400_v45 }
 0x1d2   : > { %v3364_v0 = vpop.f32.mrf.mxu0  ;;  %v3366_v49 = vpop.f32.mrf.mxu1  ;;  %v1137_v51 = vmax.f32 %v3269_v37, %v1144_v30 }
 0x1d3   : > { %4644 = vst [vmem:[#allocation91_spill] sm:$0xff] %v3364_v0  ;;  %v1072_v0 = vmax.f32 %v1070_v38, %v3241_v5 }
 0x1d4   : > { %4645 = vst [vmem:[#allocation92_spill] sm:$0xff] %v3366_v49  ;;  %v1139_v1 = vmax.f32 %v1137_v51, %v3283_v60  ;;  %v3404_v5 = vpop.f32.mrf.mxu2 }
 0x1d5   : > { %v1074_v55 = vmax.f32 %v1072_v0, %v3257_v21  ;;  %v1098_v0 = vmax.f32 %v3090_v63, %v3110_v7  ;;  %v4671_v7 = vld [vmem:[#allocation51_spill] sm:$0xff] }
 0x1d6   : > { %v1141_v56 = vmax.f32 %v1139_v1, %v3294_v34 }
 0x1d7   : > { %v1076_v52 = vmax.f32 %v1074_v55, %v3271_v41  ;;  %v1100_v51 = vmax.f32 %v1098_v0, %v3128_v14 }
 0x1d8   : > { %v1143_v55 = vmax.f32 %v1141_v56, %v3310_v47  ;;  %v3419_v41 = vpop.f32.mrf.mxu3  ;;  %v1099_v56 = vmax.f32 %v3100_v3, %v3120_v11  ;;  %v4670_v11 = vld [vmem:[#allocation28_spill] sm:$0xff] }
 0x1d9   : > { %v1069_v18 = vmax.f32 %v3285_v4, %v1076_v52  ;;  %v1102_v21 = vmax.f32 %v1100_v51, %v3142_v20  ;;  %4655 = vst [vmem:[#allocation102_spill] sm:$0xff] %v3419_v41  ;;  %v4672_v4 = vld [vmem:[#allocation52_spill] sm:$0xff] }
 0x1da   : > { %v3376_v44 = vpop.f32.mrf.mxu0  ;;  %v3378_v25 = vpop.f32.mrf.mxu1  ;;  %v1145_v1 = vmax.f32 %v1143_v55, %v3322_v59 }
 0x1db   : > { %4648 = vst [vmem:[#allocation95_spill] sm:$0xff] %v3378_v25  ;;  %v1071_v30 = vmax.f32 %v1069_v18, %v3301_v9  ;;  %v1104_v34 = vmax.f32 %v1102_v21, %v3156_v26  ;;  %v1030_v18 = vmax.f32 %v3098_v2, %v3118_v10  ;;  %v1101_v21 = vmax.f32 %v1099_v56, %v3135_v17  ;;  %v4669_v17 = vld [vmem:[#allocation70_spill] sm:$0xff] }
 0x1dc   : > { %v3426_v47 = vpop.f32.mrf.mxu2 }
 0x1dd   : > { %v1073_v52 = vmax.f32 %v1071_v30, %v3314_v24  ;;  %v1106_v0 = vmax.f32 %v1104_v34, %v3170_v33  ;;  %v1146_v30 = vmax.f32 %v3330_v39, %v1145_v1  ;;  %v1032_v55 = vmax.f32 %v1030_v18, %v3133_v16 }
 0x1de   : > { %v1103_v34 = vmax.f32 %v1101_v21, %v3149_v23  ;;  %v1029_v18 = vmax.f32 %v3088_v62, %v3108_v6  ;;  %v4668_v23 = vld [vmem:[#allocation45_spill] sm:$0xff]  ;;  %v4688_v62 = vld [vmem:[#allocation55_spill] sm:$0xff] }
 0x1df   : > { %v1075_v51 = vmax.f32 %v1073_v52, %v3324_v57  ;;  %v1108_v59 = vmax.f32 %v1106_v0, %v3186_v40  ;;  %v1034_v26 = vmax.f32 %v1032_v55, %v3147_v22  ;;  %v1148_v1 = vmax.f32 %v1146_v30, %v3338_v31  ;;  %v4664_v40 = vld [vmem:[#allocation86_spill] sm:$0xff] }
 0x1e0   : > { %v1105_v0 = vmax.f32 %v1103_v34, %v3163_v29  ;;  %v3447_v57 = vpop.f32.mrf.mxu3  ;;  %v1031_v55 = vmax.f32 %v1029_v18, %v3126_v13 }
 0x1e1   : > { %v1110_v33 = vmax.f32 %v1108_v59, %v3204_v48  ;;  %v1077_v52 = vmax.f32 %v1075_v51, %v3332_v8  ;;  %v1036_v56 = vmax.f32 %v1034_v26, %v3161_v28  ;;  %4657 = vst [vmem:[#allocation104_spill] sm:$0xff] %v3447_v57  ;;  %v1150_v31 = vmax.f32 %v1148_v1, %v3350_v27  ;;  %v4658_v8 = vld [vmem:[#allocation56_spill] sm:$0xff]  ;;  %v4663_v27 = vld [vmem:[#allocation63_spill] sm:$0xff] }
 0x1e2   : > { %v3386_v49 = vpop.f32.mrf.mxu0  ;;  %v3388_v46 = vpop.f32.mrf.mxu1  ;;  %v1107_v59 = vmax.f32 %v1105_v0, %v3177_v36  ;;  %v1033_v26 = vmax.f32 %v1031_v55, %v3140_v19  ;;  %v4660_v0 = vld [vmem:[#allocation21_spill] sm:$0xff] }
 0x1e3   : > { %4650 = vst [vmem:[#allocation97_spill] sm:$0xff] %v3388_v46  ;;  %v1112_v39 = vmax.f32 %v1110_v33, %v3226_v58  ;;  %v1038_v21 = vmax.f32 %v1036_v56, %v3175_v35  ;;  %v1078_v30 = vmax.f32 %v3344_v32, %v1077_v52  ;;  %v4662_v32 = vld [vmem:[#allocation38_spill] sm:$0xff]  ;;  %v4665_v36 = vld [vmem:[#allocation89_spill] sm:$0xff] }
 0x1e4   : > { %v1109_v33 = vmax.f32 %v1107_v59, %v3193_v43  ;;  %v3459_v48 = vpop.f32.mrf.mxu2  ;;  %v1152_v59 = vmax.f32 %v1150_v31, %v4665_v36  ;;  %v4666_v43 = vld [vmem:[#allocation24_spill] sm:$0xff]  ;;  %v4676_v36 = vld [vmem:[#allocation33_spill] sm:$0xff] }
 0x1e5   : > { %v1114_v51 = vmax.f32 %v1112_v39, %v3250_v12  ;;  %v1040_v34 = vmax.f32 %v1038_v21, %v3191_v42  ;;  %v1035_v39 = vmax.f32 %v1033_v26, %v4660_v0  ;;  %v4661_v12 = vld [vmem:[#allocation37_spill] sm:$0xff]  ;;  %v1080_v21 = vmax.f32 %v1078_v30, %v4664_v40  ;;  %v4675_v30 = vld [vmem:[#allocation90_spill] sm:$0xff]  ;;  %v4677_v40 = vld [vmem:[#allocation59_spill] sm:$0xff] }
 0x1e6   : > { %v1111_v1 = vmax.f32 %v1109_v33, %v4662_v32  ;;  %v4673_v32 = vld [vmem:[#allocation78_spill] sm:$0xff] }
 0x1e7   : > { %v1116_v58 = vmax.f32 %v1114_v51, %v4658_v8  ;;  %v1042_v52 = vmax.f32 %v1040_v34, %v4661_v12  ;;  %v1037_v51 = vmax.f32 %v1035_v39, %v4666_v43  ;;  %v4667_v8 = vld [vmem:[#allocation44_spill] sm:$0xff]  ;;  %v1082_v31 = vmax.f32 %v1080_v21, %v4675_v30  ;;  %v4683_v30 = vld [vmem:[#allocation66_spill] sm:$0xff] }
 0x1e8   : > { %v1113_v20 = vmax.f32 %v1111_v1, %v4668_v23  ;;  %v1154_v39 = vmax.f32 %v1152_v59, %v3369_v54  ;;  %v4678_v23 = vld [vmem:[#allocation60_spill] sm:$0xff] }
 0x1e9   : > { %v1118_v55 = vmax.f32 %v1116_v58, %v4663_v27  ;;  %v1044_v29 = vmax.f32 %v1042_v52, %v4667_v8  ;;  %v1039_v26 = vmax.f32 %v1037_v51, %v4670_v11  ;;  %v3479_v27 = vpop.f32.mrf.mxu3  ;;  %v4684_v54 = vld [vmem:[#allocation92_spill] sm:$0xff]  ;;  %v4687_v8 = vld [vmem:[#allocation74_spill] sm:$0xff] }
 0x1ea   : > { %v3396_v61 = vpop.f32.mrf.mxu0  ;;  %v3398_v38 = vpop.f32.mrf.mxu1  ;;  %v1115_v33 = vmax.f32 %v1113_v20, %v4672_v4  ;;  %4674 = vst [vmem:[#allocation21_spill] sm:$0xff] %v3479_v27  ;;  %v4682_v4 = vld [vmem:[#allocation65_spill] sm:$0xff] }
 0x1eb   : > { %4652 = vst [vmem:[#allocation99_spill] sm:$0xff] %v3398_v38  ;;  %v1120_v14 = vmax.f32 %v1118_v55, %v4669_v17  ;;  %v1046_v34 = vmax.f32 %v1044_v29, %v4671_v7  ;;  %v1041_v52 = vmax.f32 %v1039_v26, %v4676_v36  ;;  %v4679_v17 = vld [vmem:[#allocation84_spill] sm:$0xff] }
 0x1ec   : > { %v1117_v55 = vmax.f32 %v1115_v33, %v4678_v23  ;;  %v3487_v3 = vpop.f32.mrf.mxu2  ;;  %v1156_v33 = vmax.f32 %v1154_v39, %v3384_v50  ;;  %v4685_v23 = vld [vmem:[#allocation47_spill] sm:$0xff]  ;;  %v4691_v50 = vld [vmem:[#allocation62_spill] sm:$0xff] }
 0x1ed   : > { %v1122_v58 = vmax.f32 %v1120_v14, %v4673_v32  ;;  %v1048_v1 = vmax.f32 %v1046_v34, %v4677_v40  ;;  %v4681_v14 = vld [vmem:[#allocation41_spill] sm:$0xff]  ;;  %v1084_v34 = vmax.f32 %v1082_v31, %v3374_v53  ;;  %v4693_v53 = vld [vmem:[#allocation88_spill] sm:$0xff] }
 0x1ee   : > { %v1043_v32 = vmax.f32 %v1041_v52, %v4681_v14  ;;  %v1119_v59 = vmax.f32 %v1117_v55, %v4683_v30  ;;  %v4689_v14 = vld [vmem:[#allocation80_spill] sm:$0xff]  ;;  %v1147_v39 = vmax.f32 %v3400_v45, %v1156_v33  ;;  %v3568_v30 = vld [vmem:[#allocation2] sm:$0x3] }
 0x1ef   : > { %v1124_v51 = vmax.f32 %v1122_v58, %v4679_v17  ;;  %v1050_v21 = vmax.f32 %v1048_v1, %v4682_v4  ;;  %v4686_v17 = vld [vmem:[#allocation73_spill] sm:$0xff]  ;;  %v1086_v31 = vmax.f32 %v1084_v34, %v3390_v15  ;;  %4703 = vst [vmem:[#allocation55_spill] sm:$0xff] %v3568_v30 }
 0x1f0   : > { %v1045_v58 = vmax.f32 %v1043_v32, %v4685_v23  ;;  %v1121_v7 = vmax.f32 %v1119_v59, %v4687_v8  ;;  %v4690_v4 = vld [vmem:[#allocation81_spill] sm:$0xff] }
 0x1f1   : > { %v1126_v26 = vmax.f32 %v1124_v51, %v4684_v54  ;;  %v1052_v63 = vmax.f32 %v1050_v21, %v4686_v17  ;;  %v4692_v54 = vld [vmem:[#allocation87_spill] sm:$0xff] }
 0x1f2   : > { %v3411_v37 = vpop.f32.mrf.mxu0  ;;  %v3413_v60 = vpop.f32.mrf.mxu1  ;;  %v1047_v52 = vmax.f32 %v1045_v58, %v4688_v62  ;;  %v1123_v55 = vmax.f32 %v1121_v7, %v4690_v4  ;;  %v4696_v7 = vld [vmem:[#allocation69_spill] sm:$0xff]  ;;  %v4698_v4 = vld [vmem:[#allocation83_spill] sm:$0xff] }
 0x1f3   : > { %4654 = vst [vmem:[#allocation101_spill] sm:$0xff] %v3413_v60  ;;  %v1128_v40 = vmax.f32 %v1126_v26, %v3388_v46  ;;  %v1054_v1 = vmax.f32 %v1052_v63, %v4689_v14  ;;  %v3513_v46 = vpop.f32.mrf.mxu3 }
 0x1f4   : > { %v1049_v32 = vmax.f32 %v1047_v52, %v4691_v50  ;;  %v1125_v59 = vmax.f32 %v1123_v55, %v4693_v53  ;;  %4694 = vst [vmem:[#allocation24_spill] sm:$0xff] %v3513_v46  ;;  %v3524_v45 = vpop.f32.mrf.mxu2  ;;  %v4697_v55 = vld [vmem:[#allocation77_spill] sm:$0xff]  ;;  %v1149_v53 = vmax.f32 %v1147_v39, %v3419_v41 }
 0x1f5   : > { %v1130_v51 = vmax.f32 %v1128_v40, %v3413_v60  ;;  %v1056_v21 = vmax.f32 %v1054_v1, %v4692_v54  ;;  %v1088_v1 = vmax.f32 %v1086_v31, %v3404_v5 }
 0x1f6   : > { %v1051_v40 = vmax.f32 %v1049_v32, %v4696_v7  ;;  %v1127_v33 = vmax.f32 %v1125_v59, %v3378_v25 }
 0x1f7   : > { %v1058_v34 = vmax.f32 %v1056_v21, %v3376_v44  ;;  %v1079_v15 = vmax.f32 %v3426_v47, %v1088_v1 }
 0x1f8   : > { %v1129_v60 = vmax.f32 %v1127_v33, %v3398_v38 }
 0x1f9   : > { %v1081_v1 = vmax.f32 %v1079_v15, %v3459_v48 }
 0x1fa   : > { %v3433_v9 = vpop.f32.mrf.mxu0  ;;  %v3435_v24 = vpop.f32.mrf.mxu1 }
 0x1fb   : > { %4656 = vst [vmem:[#allocation103_spill] sm:$0xff] %v3435_v24  ;;  %v1131_v59 = vmax.f32 %v1129_v60, %v3435_v24  ;;  %v3545_v60 = vpop.f32.mrf.mxu3 }
 0x1fc   : > { %4701 = vst [vmem:[#allocation47_spill] sm:$0xff] %v3545_v60 }
 0x202   : > { %v3461_v18 = vpop.f32.mrf.mxu0  ;;  %v3463_v56 = vpop.f32.mrf.mxu1 }
 0x203   : > { %4659 = vst [vmem:[#allocation105_spill] sm:$0xff] %v3463_v56  ;;  %v1132_v26 = vmax.f32 %v1130_v51, %v3463_v56  ;;  %v1053_v51 = vmax.f32 %v1051_v40, %v4697_v55  ;;  %v1060_v56 = vmax.f32 %v1058_v34, %v3396_v61 }
 0x205   : > { %v1055_v32 = vmax.f32 %v1053_v51, %v4698_v4  ;;  %v1062_v21 = vmax.f32 %v1060_v56, %v3433_v9 }
 0x20a   : > { %v3489_v29 = vpop.f32.mrf.mxu0  ;;  %v3491_v20 = vpop.f32.mrf.mxu1 }
 0x20b   : > { %4680 = vst [vmem:[#allocation37_spill] sm:$0xff] %v3491_v20  ;;  %v1064_v31 = vmax.f32 %v1062_v21, %v3489_v29  ;;  %v1133_v40 = vmax.f32 %v1131_v59, %v3491_v20  ;;  %v3549_v21 = vpop.f32.mrf.mxu2 }
 0x212   : > { %v3515_v58 = vpop.f32.mrf.mxu0  ;;  %v3517_v63 = vpop.f32.mrf.mxu1 }
 0x213   : > { %4695 = vst [vmem:[#allocation28_spill] sm:$0xff] %v3517_v63  ;;  %v1134_v52 = vmax.f32 %v1132_v26, %v3517_v63  ;;  %v4699_v26 = vld [vmem:[#allocation91_spill] sm:$0xff] }
 0x214   : > { %v1057_v8 = vmax.f32 %v1055_v32, %v4699_v26 }
 0x215   : > { %v1151_v25 = vmax.f32 %v1149_v53, %v1134_v52 }
 0x216   : > { %v1059_v39 = vmax.f32 %v1057_v8, %v3386_v49 }
 0x217   : > { %v1153_v51 = vmax.f32 %v1151_v25, %v3447_v57 }
 0x218   : > { %v1061_v52 = vmax.f32 %v1059_v39, %v3411_v37 }
 0x21a   : > { %v3537_v34 = vpop.f32.mrf.mxu0  ;;  %v3539_v33 = vpop.f32.mrf.mxu1  ;;  %v1063_v59 = vmax.f32 %v1061_v52, %v3461_v18 }
 0x21b   : > { %4700 = vst [vmem:[#allocation33_spill] sm:$0xff] %v3539_v33  ;;  %v1066_v56 = vmax.f32 %v1064_v31, %v3537_v34  ;;  %v1135_v53 = vmax.f32 %v1133_v40, %v3539_v33  ;;  %v4726_v33 = vld [vmem:[#allocation17_spill] sm:$0xff] }
 0x21c   : > { %v1065_v25 = vmax.f32 %v1063_v59, %v3515_v58 }
 0x21d   : > { %v1155_v32 = vmax.f32 %v1153_v51, %v1135_v53  ;;  %v1083_v41 = vmax.f32 %v1081_v1, %v1066_v56  ;;  %v3560_v53 = vpop.f32.mrf.mxu3  ;;  %v3563_v56 = vpop.f32.mrf.mxu2 }
 0x21e   : > { %4702 = vst [vmem:[#allocation73_spill] sm:$0xff] %v3560_v53 }
 0x21f   : > { %v1157_v8 = vmax.f32 %v1155_v32, %v3479_v27  ;;  %v1085_v40 = vmax.f32 %v1083_v41, %v3487_v3 }
 0x221   : > { %v1158_v31 = vmax.f32 %v3513_v46, %v1157_v8 }
 0x222   : > { %v3555_v57 = vpop.f32.mrf.mxu0 }
 0x223   : > { %v1067_v39 = vmax.f32 %v1065_v25, %v3555_v57  ;;  %v1159_v15 = vmax.f32 %v3545_v60, %v1158_v31 }
 0x225   : > { %v1087_v51 = vmax.f32 %v1085_v40, %v1067_v39  ;;  %v1160_v1 = vmax.f32 %v3560_v53, %v1159_v15  ;;  %v4722_v53 = vld [vmem:[#allocation15_spill] sm:$0xff] }
 0x227   : > { %v1089_v52 = vmax.f32 %v1087_v51, %v3524_v45  ;;  %v1161_v8 = vrot.slane %v1160_v1, 4 }
 0x229   : > { %v1090_v32 = vmax.f32 %v3549_v21, %v1089_v52  ;;  %v1162_v41 = vmax.f32 %v1160_v1, %v1161_v8 }
 0x22b   : > { %v1091_v59 = vmax.f32 %v3563_v56, %v1090_v32  ;;  %v1163_v25 = vrot.slane %v1162_v41, 2 }
 0x22d   : > { %v1092_v27 = vrot.slane %v1091_v59, 4  ;;  %v1164_v31 = vmax.f32 %v1162_v41, %v1163_v25 }
 0x22f   : > { %v1093_v46 = vmax.f32 %v1091_v59, %v1092_v27  ;;  %v1165_v39 = vrot.slane %v1164_v31, 1 }
 0x231   : > { %v1094_v20 = vrot.slane %v1093_v46, 2  ;;  %v1166_v24 = vmax.f32 %v1164_v31, %v1165_v39 }
 0x233   : > { %v1095_v40 = vmax.f32 %v1093_v46, %v1094_v20  ;;  %v1169_v38 = vrot.slane %v1166_v24, 7  ;;  %v4716_v20 = vld [vmem:[#allocation14_spill] sm:$0xff]  ;;  %v1711_v24 = vlaneseq }
 0x235   : > { %v1096_v60 = vrot.slane %v1095_v40, 1  ;;  %vm3742_vm3 = vcmp.lt.s32.totalorder %v1711_v24, 256 }
 0x237   : > { %v1097_v51 = vmax.f32 %v1095_v40, %v1096_v60 }
 0x239   : > { %v1170_v15 = vsel %vm603_vm1, %v1097_v51, %v1169_v38 }
 0x23a   : > { %v3572_v52 = vmax.f32 %v3568_v30, %v1170_v15 }
 0x23c   : > { %4704 = vst [vmem:[#allocation80_spill] sm:$0xff] %v3572_v52  ;;  %v3575_v32 = vperm.slane %v3572_v52, 0  ;;  %v3578_v27 = vperm.slane %v3572_v52, 1 }
 0x23d   : > { %2001 = vst.msk [vmem:[#allocation2] sm:$0x3] %vm3742_vm3, %v3572_v52 }
 0x23e   : > { %v1211_v1 = vsub.f32 %v4661_v12, %v3575_v32  ;;  %v1209_v59 = vsub.f32 %v4676_v36, %v3575_v32  ;;  %v1207_v8 = vsub.f32 %v3191_v42, %v3575_v32  ;;  %v1205_v25 = vsub.f32 %v4670_v11, %v3575_v32 }
 0x23f   : > { %v1203_v40 = vsub.f32 %v3175_v35, %v3575_v32  ;;  %v1201_v51 = vsub.f32 %v4666_v43, %v3575_v32  ;;  %v1199_v36 = vsub.f32 %v3161_v28, %v3575_v32  ;;  %v1197_v11 = vsub.f32 %v4660_v0, %v3575_v32 }
 0x240   : > { %v1369_v41 = vmul.f32 1.442695, %v1211_v1  ;;  %v1365_v31 = vmul.f32 1.442695, %v1209_v59  ;;  %v1361_v39 = vmul.f32 1.442695, %v1207_v8  ;;  %v1195_v43 = vsub.f32 %v3147_v22, %v3575_v32 }
 0x241   : > { %v1357_v12 = vmul.f32 1.442695, %v1205_v25  ;;  %v1353_v15 = vmul.f32 1.442695, %v1203_v40  ;;  %v1349_v1 = vmul.f32 1.442695, %v1201_v51  ;;  %v1193_v8 = vsub.f32 %v3140_v19, %v3575_v32 }
 0x242   : > { %2437 = vpow2.f32 %v1369_v41  ;;  %v1345_v59 = vmul.f32 1.442695, %v1199_v36  ;;  %v1341_v41 = vmul.f32 1.442695, %v1197_v11  ;;  %v1191_v25 = vsub.f32 %v3133_v16, %v3575_v32 }
 0x243   : > { %2439 = vpow2.f32 %v1365_v31  ;;  %v1337_v31 = vmul.f32 1.442695, %v1195_v43  ;;  %v1189_v40 = vsub.f32 %v3126_v13, %v3575_v32  ;;  %v1187_v51 = vsub.f32 %v3118_v10, %v3575_v32  ;;  %v4705_v43 = vld [vmem:[#allocation12_spill] sm:$0xff] }
 0x244   : > { %2441 = vpow2.f32 %v1361_v39  ;;  %v1333_v39 = vmul.f32 1.442695, %v1193_v8  ;;  %v1185_v36 = vsub.f32 %v3108_v6, %v3575_v32  ;;  %v1183_v11 = vsub.f32 %v3098_v2, %v3575_v32 }
 0x245   : > { %2443 = vpow2.f32 %v1357_v12  ;;  %v1329_v12 = vmul.f32 1.442695, %v1191_v25  ;;  %v1184_v46 = vsub.f32 %v4716_v20, %v3578_v27  ;;  %v4719_v20 = vmov 0 }
 0x246   : > { %2445 = vpow2.f32 %v1353_v15  ;;  %v1325_v15 = vmul.f32 1.442695, %v1189_v40  ;;  %v1317_v8 = vmul.f32 1.442695, %v1185_v36  ;;  %v1313_v25 = vmul.f32 1.442695, %v1183_v11 }
 0x247   : > { %2447 = vpow2.f32 %v1349_v1  ;;  %v1321_v1 = vmul.f32 1.442695, %v1187_v51  ;;  %v1239_v51 = vsub.f32 %v4692_v54, %v3575_v32  ;;  %v1237_v36 = vsub.f32 %v4698_v4, %v3575_v32 }
 0x248   : > { %v3604_v42 = vpop.eup %2437  ;;  %2449 = vpow2.f32 %v1345_v59  ;;  %v1181_v59 = vsub.f32 %v4705_v43, %v3575_v32  ;;  %v1235_v11 = vsub.f32 %v4689_v14, %v3575_v32  ;;  %v1233_v43 = vsub.f32 %v4697_v55, %v3575_v32 }
 0x249   : > { %1753 = vmatpush.msrb.mxu2 %v3604_v42  ;;  %v3609_v35 = vpop.eup %2439  ;;  %2451 = vpow2.f32 %v1341_v41  ;;  %v1243_v41 = vsub.f32 %v3376_v44, %v3575_v32  ;;  %v4720_v20 = vsel %vm3742_vm3, 4294967295, %v4719_v20  ;;  %v1190_v63 = vsub.f32 %v4726_v33, %v3578_v27 }
 0x24a   : > { %v3614_v28 = vpop.eup %2441  ;;  %2453 = vpow2.f32 %v1337_v31  ;;  %v1241_v31 = vsub.f32 %v4699_v26, %v3575_v32  ;;  %v1309_v40 = vmul.f32 1.442695, %v1181_v59  ;;  %v1421_v59 = vmul.f32 1.442695, %v1237_v36  ;;  %4721 = vst [vmem:[#allocation83_spill] sm:$0xff] %v4720_v20 }
 0x24b   : > { %1754 = vmatpush.msrb.mxu2 %v3609_v35  ;;  %v3619_v0 = vpop.eup %2443  ;;  %2455 = vpow2.f32 %v1333_v39  ;;  %v1433_v44 = vmul.f32 1.442695, %v1243_v41  ;;  %v1417_v41 = vmul.f32 1.442695, %v1235_v11  ;;  %v1225_v36 = vsub.f32 %v4691_v50, %v3575_v32  ;;  %v4711_v11 = vld [vmem:[#allocation59_spill] sm:$0xff] }
 0x24c   : > { %v3624_v22 = vpop.eup %2445  ;;  %2457 = vpow2.f32 %v1329_v12  ;;  %v1429_v26 = vmul.f32 1.442695, %v1241_v31  ;;  %v1413_v31 = vmul.f32 1.442695, %v1233_v43 }
 0x24d   : > { %1755 = vmatpush.msrb.mxu2 %v3614_v28  ;;  %v3629_v19 = vpop.eup %2447  ;;  %2459 = vpow2.f32 %v1325_v15 }
 0x24e   : > { %v3634_v16 = vpop.eup %2449  ;;  %2461 = vpow2.f32 %v1321_v1  ;;  %v1425_v1 = vmul.f32 1.442695, %v1239_v51 }
 0x24f   : > { %1756 = vmatpush.msrb.mxu2 %v3619_v0  ;;  %v3639_v13 = vpop.eup %2451  ;;  %2463 = vpow2.f32 %v1317_v8  ;;  %v1231_v8 = vsub.f32 %v4686_v17, %v3575_v32 }
 0x250   : > { %v3644_v10 = vpop.eup %2453  ;;  %2465 = vpow2.f32 %v1313_v25  ;;  %v1229_v25 = vsub.f32 %v4696_v7, %v3575_v32 }
 0x251   : > { %1757 = vmatpush.msrb.mxu2 %v3624_v22  ;;  %v3649_v6 = vpop.eup %2455  ;;  %2467 = vpow2.f32 %v1309_v40  ;;  %v4708_v40 = vld [vmem:[#allocation65_spill] sm:$0xff] }
 0x252   : > { %v3654_v2 = vpop.eup %2457  ;;  %2469 = vpow2.f32 %v1433_v44  ;;  %v1227_v51 = vsub.f32 %v4708_v40, %v3575_v32  ;;  %v1409_v44 = vmul.f32 1.442695, %v1231_v8  ;;  %v1221_v8 = vsub.f32 %v4688_v62, %v3575_v32 }
 0x253   : > { %1758 = vmatpush.msrb.mxu2 %v3629_v19  ;;  %v3659_v39 = vpop.eup %2459  ;;  %2471 = vpow2.f32 %v1429_v26  ;;  %v1405_v26 = vmul.f32 1.442695, %v1229_v25  ;;  %v4712_v25 = vld [vmem:[#allocation51_spill] sm:$0xff] }
 0x254   : > { %v3664_v12 = vpop.eup %2461  ;;  %2473 = vpow2.f32 %v1425_v1  ;;  %v1223_v1 = vsub.f32 %v4711_v11, %v3575_v32  ;;  %v1401_v43 = vmul.f32 1.442695, %v1227_v51  ;;  %v1389_v11 = vmul.f32 1.442695, %v1221_v8 }
 0x255   : > { %1759 = vmatpush.msrb.mxu2 %v3634_v16  ;;  %v3669_v15 = vpop.eup %2463  ;;  %2475 = vpow2.f32 %v1421_v59 }
 0x256   : > { %v3674_v54 = vpop.eup %2465  ;;  %2477 = vpow2.f32 %v1417_v41  ;;  %v1397_v41 = vmul.f32 1.442695, %v1225_v36  ;;  %v1393_v40 = vmul.f32 1.442695, %v1223_v1  ;;  %v4713_v36 = vld [vmem:[#allocation44_spill] sm:$0xff]  ;;  %v4714_v1 = vld [vmem:[#allocation13_spill] sm:$0xff] }
 0x257   : > { %1760 = vmatpush.msrb.mxu2 %v3639_v13  ;;  %v3679_v4 = vpop.eup %2467  ;;  %2479 = vpow2.f32 %v1413_v31  ;;  %v1219_v31 = vsub.f32 %v4712_v25, %v3575_v32 }
 0x258   : > { %v3684_v14 = vpop.eup %2469  ;;  %2481 = vpow2.f32 %v1409_v44  ;;  %v1217_v44 = vsub.f32 %v4685_v23, %v3575_v32  ;;  %v4715_v23 = vld [vmem:[#allocation41_spill] sm:$0xff] }
 0x259   : > { %1761 = vmatpush.msrb.mxu2 %v3644_v10  ;;  %4706 = vst [vmem:[#allocation62_spill] sm:$0xff] %v3684_v14  ;;  %1782 = vmatpush.msrb.mxu3 %v3684_v14  ;;  %v3689_v55 = vpop.eup %2471  ;;  %2483 = vpow2.f32 %v1405_v26  ;;  %v1215_v26 = vsub.f32 %v4713_v36, %v3575_v32  ;;  %v1385_v38 = vmul.f32 1.442695, %v1219_v31  ;;  %v1213_v8 = vsub.f32 %v4715_v23, %v3575_v32  ;;  %v4717_v31 = vld [vmem:[#allocation58_spill] sm:$0xff] }
 0x25a   : > { %4707 = vst [vmem:[#allocation87_spill] sm:$0xff] %v3689_v55  ;;  %v3694_v17 = vpop.eup %2473  ;;  %2485 = vpow2.f32 %v1401_v43  ;;  %v1182_v43 = vsub.f32 %v4714_v1, %v3578_v27  ;;  %v4728_v14 = vld [vmem:[#allocation18_spill] sm:$0xff] }
 0x25b   : > { %1762 = vmatpush.msrb.mxu2 %v3649_v6  ;;  %1783 = vmatpush.msrb.mxu3 %v3689_v55  ;;  %4709 = vst [vmem:[#allocation69_spill] sm:$0xff] %v3694_v17  ;;  %v3699_v7 = vpop.eup %2475  ;;  %2487 = vpow2.f32 %v1397_v41  ;;  %v1381_v41 = vmul.f32 1.442695, %v1217_v44  ;;  %v1377_v1 = vmul.f32 1.442695, %v1215_v26  ;;  %v4718_v44 = vld [vmem:[#allocation54_spill] sm:$0xff]  ;;  %v1192_v55 = vsub.f32 %v4728_v14, %v3578_v27 }
 0x25c   : > { %4710 = vst [vmem:[#allocation77_spill] sm:$0xff] %v3699_v7  ;;  %v3704_v59 = vpop.eup %2477  ;;  %2489 = vpow2.f32 %v1393_v40  ;;  %v1275_v40 = vsub.f32 %v4717_v31, %v3575_v32  ;;  %v1311_v60 = vmul.f32 1.442695, %v1182_v43  ;;  %v1373_v23 = vmul.f32 1.442695, %v1213_v8  ;;  %v4723_v43 = vld [vmem:[#allocation50_spill] sm:$0xff] }
 0x25d   : > { %1763 = vmatpush.msrb.mxu2 %v3654_v2  ;;  %1784 = vmatpush.msrb.mxu3 %v3694_v17  ;;  %v3709_v50 = vpop.eup %2479  ;;  %2491 = vpow2.f32 %v1389_v11  ;;  %v1273_v11 = vsub.f32 %v4718_v44, %v3575_v32  ;;  %v1186_v31 = vsub.f32 %v4722_v53, %v3578_v27  ;;  %v1315_v26 = vmul.f32 1.442695, %v1184_v46  ;;  %v4725_v46 = vld [vmem:[#allocation46_spill] sm:$0xff] }
 0x25e   : > { %v3714_v51 = vpop.eup %2481  ;;  %2493 = vpow2.f32 %v1385_v38  ;;  %v1271_v8 = vsub.f32 %v4723_v43, %v3575_v32  ;;  %v1497_v24 = vmul.f32 1.442695, %v1275_v40  ;;  %v1269_v20 = vsub.f32 %v4725_v46, %v3575_v32 }
 0x25f   : > { %1764 = vmatpush.msrb.mxu2 %v3659_v39  ;;  %1785 = vmatpush.msrb.mxu3 %v3699_v7  ;;  %v3719_v62 = vpop.eup %2483  ;;  %2495 = vpow2.f32 %v1381_v41  ;;  %v4724_v41 = vld [vmem:[#allocation16_spill] sm:$0xff]  ;;  %v1493_v52 = vmul.f32 1.442695, %v1273_v11  ;;  %v1319_v43 = vmul.f32 1.442695, %v1186_v31  ;;  %v1567_v11 = vadd.f32 %v3679_v4, %v3674_v54 }
 0x260   : > { %v3726_v25 = vpop.eup %2485  ;;  %2497 = vpow2.f32 %v1377_v1  ;;  %v1188_v44 = vsub.f32 %v4724_v41, %v3578_v27  ;;  %v1489_v41 = vmul.f32 1.442695, %v1271_v8  ;;  %v4730_v8 = vld [vmem:[#allocation19_spill] sm:$0xff]  ;;  %v1327_v14 = vmul.f32 1.442695, %v1190_v63 }
 0x261   : > { %1765 = vmatpush.msrb.mxu2 %v3664_v12  ;;  %1786 = vmatpush.msrb.mxu3 %v3704_v59  ;;  %v3733_v36 = vpop.eup %2487  ;;  %2499 = vpow2.f32 %v1311_v60  ;;  %v4727_v60 = vld [vmem:[#allocation40_spill] sm:$0xff] }
 0x262   : > { %v3738_v30 = vpop.eup %2489  ;;  %2501 = vpow2.f32 %v1373_v23  ;;  %v1267_v1 = vsub.f32 %v4727_v60, %v3575_v32  ;;  %v1323_v46 = vmul.f32 1.442695, %v1188_v44  ;;  %v4729_v23 = vld [vmem:[#allocation36_spill] sm:$0xff]  ;;  %v1568_v44 = vadd.f32 %v3669_v15, %v1567_v11  ;;  %v4734_v11 = vld [vmem:[#allocation22_spill] sm:$0xff] }
 0x263   : > { %1766 = vmatpush.msrb.mxu2 %v3669_v15  ;;  %1787 = vmatpush.msrb.mxu3 %v3709_v50  ;;  %v3752_v38 = vpop.eup %2491  ;;  %2503 = vpow2.f32 %v1315_v26  ;;  %v1265_v31 = vsub.f32 %v4729_v23, %v3575_v32  ;;  %v1485_v26 = vmul.f32 1.442695, %v1269_v20 }
 0x264   : > { %v3759_v53 = vpop.eup %2493  ;;  %2505 = vpow2.f32 %v1497_v24  ;;  %v1194_v24 = vsub.f32 %v4730_v8, %v3578_v27  ;;  %v1481_v7 = vmul.f32 1.442695, %v1267_v1  ;;  %v1331_v8 = vmul.f32 1.442695, %v1192_v55 }
 0x265   : > { %1767 = vmatpush.msrb.mxu2 %v3674_v54  ;;  %1788 = vmatpush.msrb.mxu3 %v3714_v51  ;;  %v3766_v40 = vpop.eup %2495  ;;  %2507 = vpow2.f32 %v1493_v52  ;;  %v4732_v52 = vld [vmem:[#allocation20_spill] sm:$0xff]  ;;  %v1569_v63 = vadd.f32 %v3664_v12, %v1568_v44 }
 0x266   : > { %v3775_v33 = vpop.eup %2497  ;;  %2509 = vpow2.f32 %v1319_v43  ;;  %v1196_v23 = vsub.f32 %v4732_v52, %v3578_v27  ;;  %v1477_v43 = vmul.f32 1.442695, %v1265_v31  ;;  %v1335_v1 = vmul.f32 1.442695, %v1194_v24  ;;  %v4735_v31 = vld [vmem:[#allocation23_spill] sm:$0xff] }
 0x267   : > { %1768 = vmatpush.msrb.mxu2 %v3679_v4  ;;  %1789 = vmatpush.msrb.mxu3 %v3719_v62  ;;  %v3779_v17 = vpop.eup %2499  ;;  %v4731_v4 = vld [vmem:[#allocation32_spill] sm:$0xff]  ;;  %2511 = vpow2.f32 %v1489_v41  ;;  %v1570_v41 = vadd.f32 %v3659_v39, %v1569_v63 }
 0x268   : > { %v3785_v54 = vpop.eup %2501  ;;  %v1263_v60 = vsub.f32 %v4731_v4, %v3575_v32  ;;  %2513 = vpow2.f32 %v1323_v46  ;;  %v1198_v4 = vsub.f32 %v4734_v11, %v3578_v27  ;;  %v1339_v44 = vmul.f32 1.442695, %v1196_v23  ;;  %v4737_v11 = vld [vmem:[#allocation25_spill] sm:$0xff] }
 0x269   : > { %1790 = vmatpush.msrb.mxu3 %v3726_v25  ;;  %v3789_v20 = vpop.eup %2503  ;;  %2515 = vpow2.f32 %v1485_v26  ;;  %v1200_v26 = vsub.f32 %v4735_v31, %v3578_v27  ;;  %v1571_v24 = vadd.f32 %v3654_v2, %v1570_v41  ;;  %v1202_v31 = vsub.f32 %v4737_v11, %v3578_v27 }
 0x26a   : > { %v3795_v15 = vpop.eup %2505  ;;  %2517 = vpow2.f32 %v1327_v14  ;;  %v1473_v55 = vmul.f32 1.442695, %v1263_v60  ;;  %v1636_v12 = vadd.f32 %v3789_v20, %v3779_v17  ;;  %v4736_v14 = vsub.f32 %v3555_v57, %v3575_v32 }
 0x26b   : > { %1791 = vmatpush.msrb.mxu3 %v3733_v36  ;;  %4733 = vst [vmem:[#allocation91_spill] sm:$0xff] %v3795_v15  ;;  %1811 = vmatpush.msra.mxu2 %v3795_v15  ;;  %v3801_v52 = vpop.eup %2507  ;;  %2519 = vpow2.f32 %v1481_v7  ;;  %v1343_v23 = vmul.f32 1.442695, %v1198_v4  ;;  %v1572_v2 = vadd.f32 %v3649_v6, %v1571_v24  ;;  %v1255_v57 = vsub.f32 %v3489_v29, %v3575_v32  ;;  %v4739_v4 = vld [vmem:[#allocation26_spill] sm:$0xff] }
 0x26c   : > { %v3805_v46 = vpop.eup %2509  ;;  %2521 = vpow2.f32 %v1331_v8  ;;  %v1469_v7 = vmul.f32 1.442695, %v4736_v14  ;;  %v1347_v6 = vmul.f32 1.442695, %v1200_v26  ;;  %v1253_v29 = vsub.f32 %v3461_v18, %v3575_v32  ;;  %v4741_v26 = vld [vmem:[#allocation29_spill] sm:$0xff] }
 0x26d   : > { %1792 = vmatpush.msrb.mxu3 %v3738_v30  ;;  %1812 = vmatpush.msra.mxu2 %v3801_v52  ;;  %v3811_v39 = vpop.eup %2511  ;;  %2523 = vpow2.f32 %v1477_v43  ;;  %v1637_v60 = vadd.f32 %v3805_v46, %v1636_v12  ;;  %v4738_v43 = vsub.f32 %v3537_v34, %v3575_v32  ;;  %v1573_v24 = vadd.f32 %v3644_v10, %v1572_v2 }
 0x26e   : > { %v3817_v63 = vpop.eup %2513  ;;  %2525 = vpow2.f32 %v1335_v1  ;;  %v1204_v1 = vsub.f32 %v4739_v4, %v3578_v27  ;;  %v4740_v34 = vsub.f32 %v3515_v58, %v3575_v32  ;;  %v1351_v10 = vmul.f32 1.442695, %v1202_v31 }
 0x26f   : > { %1793 = vmatpush.msrb.mxu3 %v3752_v38  ;;  %1813 = vmatpush.msra.mxu2 %v3811_v39  ;;  %v3823_v8 = vpop.eup %2515  ;;  %v1465_v41 = vmul.f32 1.442695, %v4738_v43  ;;  %2527 = vpow2.f32 %v1473_v55  ;;  %v1638_v12 = vadd.f32 %v3817_v63, %v1637_v60  ;;  %v1574_v2 = vadd.f32 %v3639_v13, %v1573_v24 }
 0x270   : > { %v3831_v14 = vpop.eup %2517  ;;  %2529 = vpow2.f32 %v1339_v44  ;;  %v1461_v55 = vmul.f32 1.442695, %v4740_v34  ;;  %v1206_v44 = vsub.f32 %v4741_v26, %v3578_v27  ;;  %v1251_v18 = vsub.f32 %v3433_v9, %v3575_v32  ;;  %v4742_v34 = vld [vmem:[#allocation30_spill] sm:$0xff] }
 0x271   : > { %1794 = vmatpush.msrb.mxu3 %v3759_v53  ;;  %1814 = vmatpush.msra.mxu2 %v3823_v8  ;;  %v3837_v11 = vpop.eup %2519  ;;  %2531 = vpow2.f32 %v1469_v7  ;;  %v1639_v60 = vadd.f32 %v3831_v14, %v1638_v12  ;;  %v1457_v58 = vmul.f32 1.442695, %v1255_v57  ;;  %v1208_v26 = vsub.f32 %v4742_v34, %v3578_v27 }
 0x272   : > { %v3845_v43 = vpop.eup %2521  ;;  %2533 = vpow2.f32 %v1343_v23  ;;  %v1355_v31 = vmul.f32 1.442695, %v1204_v1  ;;  %v1575_v13 = vadd.f32 %v3634_v16, %v1574_v2  ;;  %v1249_v9 = vsub.f32 %v3411_v37, %v3575_v32 }
 0x273   : > { %1795 = vmatpush.msrb.mxu3 %v3766_v40  ;;  %1815 = vmatpush.msra.mxu2 %v3837_v11  ;;  %v3851_v4 = vpop.eup %2523  ;;  %2535 = vpow2.f32 %v1465_v41  ;;  %v1640_v7 = vadd.f32 %v3845_v43, %v1639_v60  ;;  %v1453_v57 = vmul.f32 1.442695, %v1253_v29  ;;  %v4743_v60 = vld [vmem:[#allocation34_spill] sm:$0xff]  ;;  %v1359_v1 = vmul.f32 1.442695, %v1206_v44 }
 0x274   : > { %v3856_v12 = vpop.eup %2525  ;;  %2537 = vpow2.f32 %v1347_v6  ;;  %v1210_v34 = vsub.f32 %v4743_v60, %v3578_v27  ;;  %v1576_v16 = vadd.f32 %v3629_v19, %v1575_v13  ;;  %v1247_v37 = vsub.f32 %v3396_v61, %v3575_v32 }
 0x275   : > { %1796 = vmatpush.msrb.mxu3 %v3775_v33  ;;  %1816 = vmatpush.msra.mxu2 %v3851_v4  ;;  %v3862_v23 = vpop.eup %2527  ;;  %2539 = vpow2.f32 %v1461_v55  ;;  %v1641_v41 = vadd.f32 %v3856_v12, %v1640_v7  ;;  %v1449_v29 = vmul.f32 1.442695, %v1251_v18  ;;  %v4744_v7 = vld [vmem:[#allocation38_spill] sm:$0xff]  ;;  %v1363_v44 = vmul.f32 1.442695, %v1208_v26 }
 0x276   : > { %v3867_v24 = vpop.eup %2529  ;;  %2541 = vpow2.f32 %v1351_v10  ;;  %v1212_v60 = vsub.f32 %v4744_v7, %v3578_v27  ;;  %v1577_v19 = vadd.f32 %v3624_v22, %v1576_v16  ;;  %v1245_v61 = vsub.f32 %v3386_v49, %v3575_v32 }
 0x277   : > { %1797 = vmatpush.msrb.mxu3 %v3785_v54  ;;  %1817 = vmatpush.msra.mxu2 %v3862_v23  ;;  %v3873_v6 = vpop.eup %2531  ;;  %2543 = vpow2.f32 %v1457_v58  ;;  %v1642_v55 = vadd.f32 %v3867_v24, %v1641_v41  ;;  %v1445_v18 = vmul.f32 1.442695, %v1249_v9  ;;  %v4745_v41 = vld [vmem:[#allocation42_spill] sm:$0xff]  ;;  %v1367_v26 = vmul.f32 1.442695, %v1210_v34 }
 0x278   : > { %v3878_v2 = vpop.eup %2533  ;;  %2545 = vpow2.f32 %v1355_v31  ;;  %v1214_v7 = vsub.f32 %v4745_v41, %v3578_v27  ;;  %v1578_v22 = vadd.f32 %v3619_v0, %v1577_v19  ;;  %v1307_v49 = vsub.f32 %v3563_v56, %v3575_v32 }
 0x279   : > { %1818 = vmatpush.msra.mxu2 %v3873_v6  ;;  %v3884_v10 = vpop.eup %2535  ;;  %2547 = vpow2.f32 %v1453_v57  ;;  %v1643_v58 = vadd.f32 %v3878_v2, %v1642_v55  ;;  %v1441_v9 = vmul.f32 1.442695, %v1247_v37  ;;  %v4746_v55 = vld [vmem:[#allocation45_spill] sm:$0xff]  ;;  %v1371_v34 = vmul.f32 1.442695, %v1212_v60 }
 0x27a   : > { %v3889_v13 = vpop.eup %2537  ;;  %2549 = vpow2.f32 %v1359_v1  ;;  %v1216_v41 = vsub.f32 %v4746_v55, %v3578_v27  ;;  %v1579_v0 = vadd.f32 %v3614_v28, %v1578_v22  ;;  %v1305_v56 = vsub.f32 %v3549_v21, %v3575_v32 }
 0x27b   : > { %1819 = vmatpush.msra.mxu2 %v3884_v10  ;;  %v3895_v31 = vpop.eup %2539  ;;  %2551 = vpow2.f32 %v1449_v29  ;;  %v1644_v57 = vadd.f32 %v3889_v13, %v1643_v58  ;;  %v1437_v37 = vmul.f32 1.442695, %v1245_v61  ;;  %v4747_v58 = vld [vmem:[#allocation48_spill] sm:$0xff]  ;;  %v1375_v60 = vmul.f32 1.442695, %v1214_v7 }
 0x27c   : > { %v3900_v16 = vpop.eup %2541  ;;  %2553 = vpow2.f32 %v1363_v44  ;;  %v1218_v55 = vsub.f32 %v4747_v58, %v3578_v27  ;;  %v1580_v28 = vadd.f32 %v3609_v35, %v1579_v0  ;;  %v1303_v21 = vsub.f32 %v3524_v45, %v3575_v32 }
 0x27d   : > { %1820 = vmatpush.msra.mxu2 %v3895_v31  ;;  %v3906_v1 = vpop.eup %2543  ;;  %2555 = vpow2.f32 %v1445_v18  ;;  %v1645_v29 = vadd.f32 %v3900_v16, %v1644_v57  ;;  %v1561_v61 = vmul.f32 1.442695, %v1307_v49  ;;  %v4748_v57 = vld [vmem:[#allocation52_spill] sm:$0xff]  ;;  %v1379_v7 = vmul.f32 1.442695, %v1216_v41 }
 0x27e   : > { %v3911_v19 = vpop.eup %2545  ;;  %2557 = vpow2.f32 %v1367_v26  ;;  %v1220_v58 = vsub.f32 %v4748_v57, %v3578_v27  ;;  %v1581_v35 = vadd.f32 %v3604_v42, %v1580_v28  ;;  %v1301_v45 = vsub.f32 %v3487_v3, %v3575_v32 }
 0x27f   : > { %1821 = vmatpush.msra.mxu2 %v3906_v1  ;;  %v3917_v44 = vpop.eup %2547  ;;  %2559 = vpow2.f32 %v1441_v9  ;;  %v1646_v18 = vadd.f32 %v3911_v19, %v1645_v29  ;;  %v1557_v49 = vmul.f32 1.442695, %v1305_v56  ;;  %v4749_v29 = vld [vmem:[#allocation56_spill] sm:$0xff]  ;;  %v1383_v41 = vmul.f32 1.442695, %v1218_v55 }
 0x280   : > { %v3922_v22 = vpop.eup %2549  ;;  %2561 = vpow2.f32 %v1371_v34  ;;  %v1222_v57 = vsub.f32 %v4749_v29, %v3578_v27  ;;  %v1582_v42 = vadd.f32 %v3785_v54, %v1581_v35  ;;  %v1299_v3 = vsub.f32 %v3459_v48, %v3575_v32 }
 0x281   : > { %1822 = vmatpush.msra.mxu2 %v3917_v44  ;;  %v3928_v26 = vpop.eup %2551  ;;  %2563 = vpow2.f32 %v1437_v37  ;;  %v1647_v9 = vadd.f32 %v3922_v22, %v1646_v18  ;;  %v1553_v37 = vmul.f32 1.442695, %v1303_v21  ;;  %v4750_v18 = vld [vmem:[#allocation60_spill] sm:$0xff]  ;;  %v1297_v35 = vsub.f32 %v3426_v47, %v3575_v32 }
 0x282   : > { %v3933_v0 = vpop.eup %2553  ;;  %2565 = vpow2.f32 %v1375_v60  ;;  %v1224_v15 = vsub.f32 %v4750_v18, %v3578_v27  ;;  %v1387_v60 = vmul.f32 1.442695, %v1220_v58  ;;  %v1583_v55 = vadd.f32 %v3775_v33, %v1582_v42  ;;  %v4753_v42 = vld [vmem:[#allocation66_spill] sm:$0xff] }
 0x283   : > { %1823 = vmatpush.msra.mxu2 %v3928_v26  ;;  %v3939_v34 = vpop.eup %2555  ;;  %2567 = vpow2.f32 %v1561_v61  ;;  %v1648_v56 = vadd.f32 %v3933_v0, %v1647_v9  ;;  %v1549_v48 = vmul.f32 1.442695, %v1301_v45  ;;  %v4751_v9 = vld [vmem:[#allocation63_spill] sm:$0xff]  ;;  %v1391_v18 = vmul.f32 1.442695, %v1222_v57 }
 0x284   : > { %v2558_v28 = vpop.eup %2557  ;;  %2569 = vpow2.f32 %v1379_v7  ;;  %v1226_v29 = vsub.f32 %v4751_v9, %v3578_v27  ;;  %v1584_v58 = vadd.f32 %v3766_v40, %v1583_v55  ;;  %v1295_v7 = vsub.f32 %v3404_v5, %v3575_v32  ;;  %v4755_v55 = vld [vmem:[#allocation98_spill] sm:$0xff] }
 0x285   : > { %1824 = vmatpush.msra.mxu2 %v3939_v34  ;;  %v3948_v54 = vpop.eup %2559  ;;  %2571 = vpow2.f32 %v1557_v49  ;;  %v1649_v21 = vadd.f32 %v2558_v28, %v1648_v56  ;;  %v1545_v47 = vmul.f32 1.442695, %v1299_v3  ;;  %v1395_v57 = vmul.f32 1.442695, %v1224_v15  ;;  %v4756_v15 = vld [vmem:[#allocation70_spill] sm:$0xff] }
 0x286   : > { %v2562_v61 = vpop.eup %2561  ;;  %2573 = vpow2.f32 %v1383_v41  ;;  %v1228_v41 = vsub.f32 %v4753_v42, %v3578_v27  ;;  %v1585_v40 = vadd.f32 %v3759_v53, %v1584_v58  ;;  %v1293_v5 = vsub.f32 %v4755_v55, %v3575_v32 }
 0x287   : > { %1825 = vmatpush.msra.mxu2 %v3948_v54  ;;  %v3956_v33 = vpop.eup %2563  ;;  %2575 = vpow2.f32 %v1553_v37  ;;  %v1650_v45 = vadd.f32 %v2562_v61, %v1649_v21  ;;  %v1541_v9 = vmul.f32 1.442695, %v1297_v35  ;;  %v3972_v37 = vld [vmem:[%s2969_s9] sm:$0xff]  ;;  %v3975_v21 = vld [vmem:[%s2969_s9 + $0x8] sm:$0xff]  ;;  %v1230_v53 = vsub.f32 %v4756_v15, %v3578_v27 }
 0x288   : > { %v3960_v49 = vpop.eup %2565  ;;  %2577 = vpow2.f32 %v1387_v60  ;;  %v1399_v60 = vmul.f32 1.442695, %v1226_v29  ;;  %v1586_v58 = vadd.f32 %v3752_v38, %v1585_v40  ;;  %1769 = vmatmul.f32.vlgmr.msrb.gmra.mxu2 %v3972_v37  ;;  %v1537_v55 = vmul.f32 1.442695, %v1295_v7  ;;  %1798 = vmatmul.f32.vlgmr.msrb.gmra.mxu3 %v3975_v21  ;;  %v4759_v38 = vld [vmem:[#allocation74_spill] sm:$0xff] }
 0x289   : > { %4752 = vst [vmem:[#allocation12_spill] sm:$0xff] %v3960_v49  ;;  %1826 = vmatpush.msra.mxu2 %v3956_v33  ;;  %v3966_v56 = vpop.eup %2567  ;;  %2579 = vpow2.f32 %v1549_v48  ;;  %v1651_v3 = vadd.f32 %v3960_v49, %v1650_v45  ;;  %v4758_v48 = vld [vmem:[#allocation94_spill] sm:$0xff]  ;;  %v1232_v29 = vsub.f32 %v4759_v38, %v3578_v27  ;;  %v1403_v40 = vmul.f32 1.442695, %v1228_v41 }
 0x28a   : > { %4754 = vst [vmem:[#allocation65_spill] sm:$0xff] %v3966_v56  ;;  %v3977_v42 = vpop.eup %2569  ;;  %2581 = vpow2.f32 %v1391_v18  ;;  %1840 = vmatpush.msra.mxu3 %v3966_v56  ;;  %v1291_v45 = vsub.f32 %v4758_v48, %v3575_v32  ;;  %v1587_v15 = vadd.f32 %v3738_v30, %v1586_v58  ;;  %v4761_v7 = vld [vmem:[#allocation90_spill] sm:$0xff]  ;;  %v1407_v41 = vmul.f32 1.442695, %v1230_v53  ;;  %v4765_v53 = vld [vmem:[#allocation81_spill] sm:$0xff] }
 0x28b   : > { %v3984_v35 = vpop.eup %2571  ;;  %2583 = vpow2.f32 %v1545_v47  ;;  %v1652_v49 = vadd.f32 %v3977_v42, %v1651_v3  ;;  %1869 = vmatpush.msrb.mxu2 %v2562_v61  ;;  %v1289_v47 = vsub.f32 %v4761_v7, %v3575_v32  ;;  %v1533_v3 = vmul.f32 1.442695, %v1293_v5  ;;  %v4762_v38 = vld [vmem:[#allocation78_spill] sm:$0xff] }
 0x28c   : > { %4757 = vst [vmem:[#allocation59_spill] sm:$0xff] %v3984_v35  ;;  %v3990_v18 = vpop.eup %2573  ;;  %2585 = vpow2.f32 %v1395_v57  ;;  %1841 = vmatpush.msra.mxu3 %v3984_v35  ;;  %v1234_v57 = vsub.f32 %v4762_v38, %v3578_v27  ;;  %v1588_v30 = vadd.f32 %v3733_v36, %v1587_v15  ;;  %v4764_v7 = vld [vmem:[#allocation86_spill] sm:$0xff]  ;;  %v1236_v36 = vsub.f32 %v4765_v53, %v3578_v27  ;;  %v4028_v35 = vld [vmem:[%s2969_s9 + $0x28] sm:$0xff] }
 0x28d   : > { %v3996_v56 = vpop.eup %2575  ;;  %2587 = vpow2.f32 %v1541_v9  ;;  %v1653_v61 = vadd.f32 %v3990_v18, %v1652_v49  ;;  %1870 = vmatpush.msrb.mxu2 %v2558_v28  ;;  %v1287_v5 = vsub.f32 %v4764_v7, %v3575_v32  ;;  %v1529_v9 = vmul.f32 1.442695, %v1291_v45  ;;  %v4767_v45 = vld [vmem:[#allocation82_spill] sm:$0xff]  ;;  %4768 = vst [vmem:[#allocation41_spill] sm:$0xff] %v4028_v35 }
 0x28e   : > { %4760 = vst [vmem:[#allocation51_spill] sm:$0xff] %v3996_v56  ;;  %v4001_v48 = vpop.eup %2577  ;;  %2589 = vpow2.f32 %v1399_v60  ;;  %1842 = vmatpush.msra.mxu3 %v3996_v56  ;;  %v1411_v60 = vmul.f32 1.442695, %v1232_v29  ;;  %v1589_v15 = vadd.f32 %v3726_v25, %v1588_v30  ;;  %v1525_v7 = vmul.f32 1.442695, %v1289_v47  ;;  %v4769_v25 = vld [vmem:[#allocation84_spill] sm:$0xff] }
 0x28f   : > { %v4007_v58 = vpop.eup %2579  ;;  %2591 = vpow2.f32 %v1537_v55  ;;  %v1654_v28 = vadd.f32 %v4001_v48, %v1653_v61  ;;  %1871 = vmatpush.msrb.mxu2 %v3933_v0  ;;  %v1285_v55 = vsub.f32 %v4767_v45, %v3575_v32  ;;  %v4025_v61 = vld [vmem:[%s2969_s9 + $0x20] sm:$0xff]  ;;  %v1415_v30 = vmul.f32 1.442695, %v1234_v57 }
 0x290   : > { %4763 = vst [vmem:[#allocation44_spill] sm:$0xff] %v4007_v58  ;;  %v4013_v49 = vpop.eup %2581  ;;  %2593 = vpow2.f32 %v1403_v40  ;;  %1843 = vmatpush.msra.mxu3 %v4007_v58  ;;  %v1238_v40 = vsub.f32 %v4769_v25, %v3578_v27  ;;  %v1590_v53 = vadd.f32 %v3719_v62, %v1589_v15  ;;  %1772 = vmatmul.f32.gmra.mxu2 %v4025_v61  ;;  %v1521_v45 = vmul.f32 1.442695, %v1287_v5  ;;  %v4772_v62 = vld [vmem:[#allocation88_spill] sm:$0xff]  ;;  %v4084_v58 = vld [vmem:[%s2969_s9 + $0x48] sm:$0xff] }
 0x291   : > { %v4019_v38 = vpop.eup %2583  ;;  %2595 = vpow2.f32 %v1533_v3  ;;  %v1655_v0 = vadd.f32 %v4013_v49, %v1654_v28  ;;  %1872 = vmatpush.msrb.mxu2 %v3922_v22  ;;  %v4771_v3 = vld [vmem:[#allocation76_spill] sm:$0xff]  ;;  %1801 = vmatmul.f32.gmra.mxu3 %v4028_v35  ;;  %v1419_v15 = vmul.f32 1.442695, %v1236_v36  ;;  %4779 = vst [vmem:[#allocation54_spill] sm:$0xff] %v4084_v58  ;;  %v4140_v35 = vld [vmem:[%s2969_s9 + $0x68] sm:$0xff] }
 0x292   : > { %4766 = vst [vmem:[#allocation13_spill] sm:$0xff] %v4019_v38  ;;  %v4031_v29 = vpop.eup %2585  ;;  %2597 = vpow2.f32 %v1407_v41  ;;  %1844 = vmatpush.msra.mxu3 %v4019_v38  ;;  %v1283_v28 = vsub.f32 %v4771_v3, %v3575_v32  ;;  %v1240_v41 = vsub.f32 %v4772_v62, %v3578_v27  ;;  %v1591_v25 = vadd.f32 %v3714_v51, %v1590_v53  ;;  %v4773_v5 = vld [vmem:[#allocation72_spill] sm:$0xff] }
 0x293   : > { %v4038_v47 = vpop.eup %2587  ;;  %2599 = vpow2.f32 %v1529_v9  ;;  %v1656_v22 = vadd.f32 %v4031_v29, %v1655_v0  ;;  %1873 = vmatpush.msrb.mxu2 %v3911_v19  ;;  %v1281_v9 = vsub.f32 %v4773_v5, %v3575_v32  ;;  %v1517_v0 = vmul.f32 1.442695, %v1285_v55  ;;  %v4775_v55 = vld [vmem:[#allocation68_spill] sm:$0xff]  ;;  %4793 = vst [vmem:[#allocation50_spill] sm:$0xff] %v4140_v35 }
 0x294   : > { %4770 = vst [vmem:[#allocation14_spill] sm:$0xff] %v4038_v47  ;;  %v4045_v57 = vpop.eup %2589  ;;  %2601 = vpow2.f32 %v1411_v60  ;;  %1845 = vmatpush.msra.mxu3 %v4038_v47  ;;  %v4774_v60 = vld [vmem:[#allocation92_spill] sm:$0xff]  ;;  %v1423_v51 = vmul.f32 1.442695, %v1238_v40  ;;  %v1592_v53 = vadd.f32 %v3709_v50, %v1591_v25  ;;  %v4776_v40 = vld [vmem:[#allocation95_spill] sm:$0xff] }
 0x295   : > { %v4051_v3 = vpop.eup %2591  ;;  %2603 = vpow2.f32 %v1525_v7  ;;  %v1657_v19 = vadd.f32 %v4045_v57, %v1656_v22  ;;  %1874 = vmatpush.msrb.mxu2 %v3900_v16  ;;  %v1242_v36 = vsub.f32 %v4774_v60, %v3578_v27  ;;  %v1279_v7 = vsub.f32 %v4775_v55, %v3575_v32 }
 0x296   : > { %v4057_v56 = vpop.eup %2593  ;;  %2605 = vpow2.f32 %v1415_v30  ;;  %1846 = vmatpush.msra.mxu3 %v4051_v3  ;;  %v1513_v22 = vmul.f32 1.442695, %v1283_v28  ;;  %v1244_v50 = vsub.f32 %v4776_v40, %v3578_v27  ;;  %v1427_v30 = vmul.f32 1.442695, %v1240_v41  ;;  %v4777_v28 = vld [vmem:[#allocation64_spill] sm:$0xff]  ;;  %v4781_v40 = vld [vmem:[#allocation77_spill] sm:$0xff] }
 0x297   : > { %v4063_v62 = vpop.eup %2595  ;;  %2607 = vpow2.f32 %v1521_v45  ;;  %v1658_v16 = vadd.f32 %v4057_v56, %v1657_v19  ;;  %1875 = vmatpush.msrb.mxu2 %v3889_v13  ;;  %v1593_v25 = vadd.f32 %v3704_v59, %v1592_v53  ;;  %v1277_v45 = vsub.f32 %v4777_v28, %v3575_v32  ;;  %v4081_v19 = vld [vmem:[%s2969_s9 + $0x40] sm:$0xff]  ;;  %v4780_v59 = vld [vmem:[#allocation97_spill] sm:$0xff] }
 0x298   : > { %v4069_v5 = vpop.eup %2597  ;;  %2609 = vpow2.f32 %v1419_v15  ;;  %1847 = vmatpush.msra.mxu3 %v4063_v62  ;;  %v1509_v55 = vmul.f32 1.442695, %v1281_v9  ;;  %4778 = vst [vmem:[#allocation58_spill] sm:$0xff] %v4081_v19  ;;  %v1246_v15 = vsub.f32 %v4780_v59, %v3578_v27  ;;  %v1431_v53 = vmul.f32 1.442695, %v1242_v36  ;;  %1775 = vmatmul.f32.gmra.mxu2 %v4081_v19  ;;  %v4782_v9 = vld [vmem:[#allocation99_spill] sm:$0xff] }
 0x299   : > { %v4075_v60 = vpop.eup %2599  ;;  %2611 = vpow2.f32 %v1517_v0  ;;  %v1659_v13 = vadd.f32 %v4069_v5, %v1658_v16  ;;  %1876 = vmatpush.msrb.mxu2 %v3878_v2  ;;  %v1594_v38 = vadd.f32 %v4781_v40, %v1593_v25  ;;  %v1248_v0 = vsub.f32 %v4782_v9, %v3578_v27  ;;  %1804 = vmatmul.f32.gmra.mxu3 %v4084_v58  ;;  %v4784_v59 = vld [vmem:[#allocation69_spill] sm:$0xff] }
 0x29a   : > { %v4087_v41 = vpop.eup %2601  ;;  %2613 = vpow2.f32 %v1423_v51  ;;  %1848 = vmatpush.msra.mxu3 %v4075_v60  ;;  %v1505_v16 = vmul.f32 1.442695, %v1279_v7  ;;  %v4783_v51 = vld [vmem:[#allocation57_spill] sm:$0xff]  ;;  %v1435_v28 = vmul.f32 1.442695, %v1244_v50 }
 0x29b   : > { %v4094_v32 = vpop.eup %2603  ;;  %2615 = vpow2.f32 %v1513_v22  ;;  %v1660_v2 = vadd.f32 %v4087_v41, %v1659_v13  ;;  %1877 = vmatpush.msrb.mxu2 %v3867_v24  ;;  %v1276_v25 = vsub.f32 %v4783_v51, %v3578_v27  ;;  %v1595_v40 = vadd.f32 %v4784_v59, %v1594_v38  ;;  %v4785_v7 = vld [vmem:[#allocation101_spill] sm:$0xff]  ;;  %v4787_v51 = vld [vmem:[#allocation87_spill] sm:$0xff] }
 0x29c   : > { %v4101_v36 = vpop.eup %2605  ;;  %2617 = vpow2.f32 %v1427_v30  ;;  %1849 = vmatpush.msra.mxu3 %v4094_v32  ;;  %v1250_v22 = vsub.f32 %v4785_v7, %v3578_v27  ;;  %v1501_v13 = vmul.f32 1.442695, %v1277_v45  ;;  %v4786_v30 = vld [vmem:[#allocation53_spill] sm:$0xff]  ;;  %v1439_v38 = vmul.f32 1.442695, %v1246_v15  ;;  %v4788_v45 = vld [vmem:[#allocation103_spill] sm:$0xff] }
 0x29d   : > { %v4107_v9 = vpop.eup %2607  ;;  %2619 = vpow2.f32 %v1509_v55  ;;  %v1661_v24 = vadd.f32 %v4101_v36, %v1660_v2  ;;  %1878 = vmatpush.msrb.mxu2 %v3856_v12  ;;  %v1274_v50 = vsub.f32 %v4786_v30, %v3578_v27  ;;  %v1596_v59 = vadd.f32 %v4787_v51, %v1595_v40  ;;  %v4789_v15 = vld [vmem:[#allocation49_spill] sm:$0xff]  ;;  %v4790_v30 = vld [vmem:[#allocation62_spill] sm:$0xff] }
 0x29e   : > { %v4113_v58 = vpop.eup %2609  ;;  %2621 = vpow2.f32 %v1431_v53  ;;  %1850 = vmatpush.msra.mxu3 %v4107_v9  ;;  %v1252_v55 = vsub.f32 %v4788_v45, %v3578_v27  ;;  %v1443_v2 = vmul.f32 1.442695, %v1248_v0  ;;  %v1272_v53 = vsub.f32 %v4789_v15, %v3578_v27  ;;  %v4791_v0 = vld [vmem:[#allocation105_spill] sm:$0xff] }
 0x29f   : > { %v4119_v19 = vpop.eup %2611  ;;  %2623 = vpow2.f32 %v1505_v16  ;;  %v1662_v12 = vadd.f32 %v4113_v58, %v1661_v24  ;;  %1879 = vmatpush.msrb.mxu2 %v3845_v43  ;;  %v1499_v40 = vmul.f32 1.442695, %v1276_v25  ;;  %v1597_v51 = vadd.f32 %v4790_v30, %v1596_v59  ;;  %v4137_v24 = vld [vmem:[%s2969_s9 + $0x60] sm:$0xff] }
 0x2a0   : > { %v4125_v7 = vpop.eup %2613  ;;  %2625 = vpow2.f32 %v1435_v28  ;;  %1851 = vmatpush.msra.mxu3 %v4119_v19  ;;  %v1254_v16 = vsub.f32 %v4791_v0, %v3578_v27  ;;  %v1447_v47 = vmul.f32 1.442695, %v1250_v22  ;;  %4792 = vst [vmem:[#allocation15_spill] sm:$0xff] %v4137_v24  ;;  %v4794_v28 = vld [vmem:[#allocation43_spill] sm:$0xff]  ;;  %v1495_v15 = vmul.f32 1.442695, %v1274_v50  ;;  %1778 = vmatmul.f32.gmra.mxu2 %v4137_v24 }
 0x2a1   : > { %v4131_v45 = vpop.eup %2615  ;;  %2627 = vpow2.f32 %v1501_v13  ;;  %v1663_v43 = vadd.f32 %v4125_v7, %v1662_v12  ;;  %1880 = vmatpush.msrb.mxu2 %v3831_v14  ;;  %v1270_v59 = vsub.f32 %v4794_v28, %v3578_v27  ;;  %v1598_v30 = vadd.f32 %v3956_v33, %v1597_v51  ;;  %v4795_v13 = vld [vmem:[#allocation37_spill] sm:$0xff]  ;;  %1807 = vmatmul.f32.gmra.mxu3 %v4140_v35  ;;  %v4796_v33 = vld [vmem:[#allocation39_spill] sm:$0xff] }
 0x2a2   : > { %v4143_v25 = vpop.eup %2617  ;;  %2629 = vpow2.f32 %v1439_v38  ;;  %1852 = vmatpush.msra.mxu3 %v4131_v45  ;;  %v1256_v12 = vsub.f32 %v4795_v13, %v3578_v27  ;;  %v1451_v14 = vmul.f32 1.442695, %v1252_v55  ;;  %v1268_v38 = vsub.f32 %v4796_v33, %v3578_v27  ;;  %v4184_v33 = vld [vmem:[%s2969_s9 + $0x10] sm:$0xff] }
 0x2a3   : > { %v4150_v22 = vpop.eup %2619  ;;  %2631 = vpow2.f32 %v1443_v2  ;;  %v1664_v0 = vadd.f32 %v4143_v25, %v1663_v43  ;;  %1881 = vmatpush.msrb.mxu2 %v3817_v63  ;;  %v1491_v51 = vmul.f32 1.442695, %v1272_v53  ;;  %v1599_v28 = vadd.f32 %v3948_v54, %v1598_v30  ;;  %v4797_v63 = vld [vmem:[#allocation35_spill] sm:$0xff] }
 0x2a4   : > { %v2622_v50 = vpop.eup %2621  ;;  %2633 = vpow2.f32 %v1499_v40  ;;  %1853 = vmatpush.msra.mxu3 %v4150_v22  ;;  %v1455_v55 = vmul.f32 1.442695, %v1254_v16  ;;  %v1266_v13 = vsub.f32 %v4797_v63, %v3578_v27  ;;  %v1487_v35 = vmul.f32 1.442695, %v1270_v59  ;;  %v4798_v16 = vld [vmem:[#allocation31_spill] sm:$0xff] }
 0x2a5   : > { %v4161_v24 = vpop.eup %2623  ;;  %2635 = vpow2.f32 %v1447_v47  ;;  %v1665_v2 = vadd.f32 %v2622_v50, %v1664_v0  ;;  %1882 = vmatpush.msrb.mxu2 %v3805_v46  ;;  %v1600_v53 = vadd.f32 %v3939_v34, %v1599_v28  ;;  %v1459_v47 = vmul.f32 1.442695, %v1256_v12  ;;  %v4187_v28 = vld [vmem:[%s2969_s9 + $0x18] sm:$0xff] }
 0x2a6   : > { %v2626_v43 = vpop.eup %2625  ;;  %2637 = vpow2.f32 %v1495_v15  ;;  %1854 = vmatpush.msra.mxu3 %v4161_v24  ;;  %v1264_v30 = vsub.f32 %v4798_v16, %v3578_v27  ;;  %v1483_v59 = vmul.f32 1.442695, %v1268_v38 }
 0x2a7   : > { %v4168_v54 = vpop.eup %2627  ;;  %2639 = vpow2.f32 %v1451_v14  ;;  %v1666_v40 = vadd.f32 %v2626_v43, %v1665_v2  ;;  %1883 = vmatpush.msrb.mxu2 %v3789_v20  ;;  %v1601_v34 = vadd.f32 %v3928_v26, %v1600_v53  ;;  %v4799_v14 = vld [vmem:[#allocation28_spill] sm:$0xff]  ;;  %v4801_v26 = vld [vmem:[#allocation27_spill] sm:$0xff]  ;;  %v1479_v2 = vmul.f32 1.442695, %v1266_v13 }
 0x2a8   : > { %v4171_v46 = vpop.eup %2629  ;;  %2641 = vpow2.f32 %v1491_v51  ;;  %1855 = vmatpush.msra.mxu3 %v4168_v54  ;;  %v4800_v12 = vsub.f32 %v4799_v14, %v3578_v27  ;;  %v1262_v51 = vsub.f32 %v4801_v26, %v3578_v27  ;;  %1827 = vmatmul.f32.vlgmr.msra.gmra.mxu2 %v4184_v33  ;;  %v1475_v13 = vmul.f32 1.442695, %v1264_v30 }
 0x2a9   : > { %v4177_v15 = vpop.eup %2631  ;;  %2643 = vpow2.f32 %v1455_v55  ;;  %v1667_v20 = vadd.f32 %v4171_v46, %v1666_v40  ;;  %1884 = vmatpush.msrb.mxu2 %v3779_v17  ;;  %v1602_v55 = vadd.f32 %v3917_v44, %v1601_v34  ;;  %1856 = vmatmul.f32.vlgmr.msra.gmra.mxu3 %v4187_v28 }
 0x2aa   : > { %v1463_v0 = vmul.f32 1.442695, %v4800_v12  ;;  %1898 = vmatpush.msrb.mxu3 %v2626_v43  ;;  %v4190_v38 = vpop.eup %2633  ;;  %2645 = vpow2.f32 %v1487_v35  ;;  %v4802_v43 = vld [vmem:[#allocation33_spill] sm:$0xff]  ;;  %v1471_v34 = vmul.f32 1.442695, %v1262_v51 }
 0x2ab   : > { %v4196_v63 = vpop.eup %2635  ;;  %2647 = vpow2.f32 %v1459_v47  ;;  %v4803_v53 = vsub.f32 %v4802_v43, %v3578_v27  ;;  %v1668_v17 = vadd.f32 %v4177_v15, %v1667_v20  ;;  %1927 = vmatpush.msra.mxu2 %v4190_v38  ;;  %v1603_v44 = vadd.f32 %v3906_v1, %v1602_v55  ;;  %v4229_v20 = vld [vmem:[%s2969_s9 + $0x38] sm:$0xff] }
 0x2ac   : > { %1899 = vmatpush.msrb.mxu3 %v2622_v50  ;;  %v4203_v16 = vpop.eup %2637  ;;  %2649 = vpow2.f32 %v1483_v59 }
 0x2ad   : > { %v1467_v40 = vmul.f32 1.442695, %v4803_v53  ;;  %v4207_v35 = vpop.eup %2639  ;;  %2651 = vpow2.f32 %v1463_v0  ;;  %v1669_v47 = vadd.f32 %v4196_v63, %v1668_v17  ;;  %1928 = vmatpush.msra.mxu2 %v4203_v16  ;;  %v1604_v30 = vadd.f32 %v3895_v31, %v1603_v44  ;;  %v4226_v31 = vld [vmem:[%s2969_s9 + $0x30] sm:$0xff] }
 0x2ae   : > { %1900 = vmatpush.msrb.mxu3 %v4143_v25  ;;  %v4212_v50 = vpop.eup %2641  ;;  %2653 = vpow2.f32 %v1479_v2 }
 0x2af   : > { %v4215_v1 = vpop.eup %2643  ;;  %2655 = vpow2.f32 %v1467_v40  ;;  %v1670_v59 = vadd.f32 %v4207_v35, %v1669_v47  ;;  %1929 = vmatpush.msra.mxu2 %v4212_v50  ;;  %v1605_v14 = vadd.f32 %v3884_v10, %v1604_v30  ;;  %v4245_v47 = vld [vmem:[%s2969_s9 + $0x50] sm:$0xff] }
 0x2b0   : > { %1901 = vmatpush.msrb.mxu3 %v4125_v7  ;;  %v4220_v25 = vpop.eup %2645  ;;  %2657 = vpow2.f32 %v1475_v13  ;;  %1830 = vmatmul.f32.gmra.mxu2 %v4226_v31 }
 0x2b1   : > { %v2648_v12 = vpop.eup %2647  ;;  %v1671_v0 = vadd.f32 %v4215_v1, %v1670_v59  ;;  %1930 = vmatpush.msra.mxu2 %v4220_v25  ;;  %2659 = vpow2.f32 %v1471_v34  ;;  %v1606_v7 = vadd.f32 %v3873_v6, %v1605_v14  ;;  %1859 = vmatmul.f32.gmra.mxu3 %v4229_v20 }
 0x2b2   : > { %1902 = vmatpush.msrb.mxu3 %v4113_v58  ;;  %v2650_v26 = vpop.eup %2649 }
 0x2b3   : > { %v2652_v51 = vpop.eup %2651  ;;  %v1672_v2 = vadd.f32 %v2648_v12, %v1671_v0  ;;  %1931 = vmatpush.msra.mxu2 %v2650_v26  ;;  %v1607_v58 = vadd.f32 %v3862_v23, %v1606_v7  ;;  %v4804_v23 = vld [vmem:[#allocation73_spill] sm:$0xff]  ;;  %v4808_v7 = vld [vmem:[#allocation71_spill] sm:$0xff] }
 0x2b4   : > { %1903 = vmatpush.msrb.mxu3 %v4101_v36  ;;  %v2654_v10 = vpop.eup %2653  ;;  %v1308_v13 = vsub.f32 %v4804_v23, %v3578_v27 }
 0x2b5   : > { %v2656_v55 = vpop.eup %2655  ;;  %v1673_v43 = vadd.f32 %v2652_v51, %v1672_v2  ;;  %1932 = vmatpush.msra.mxu2 %v2654_v10  ;;  %v1608_v53 = vadd.f32 %v3851_v4, %v1607_v58  ;;  %v4805_v4 = vld [vmem:[#allocation61_spill] sm:$0xff]  ;;  %v1282_v2 = vsub.f32 %v4808_v7, %v3578_v27 }
 0x2b6   : > { %1904 = vmatpush.msrb.mxu3 %v4087_v41  ;;  %v2658_v6 = vpop.eup %2657  ;;  %v4248_v41 = vld [vmem:[%s2969_s9 + $0x58] sm:$0xff]  ;;  %v1278_v34 = vsub.f32 %v4805_v4, %v3578_v27 }
 0x2b7   : > { %v1674_v40 = vadd.f32 %v2656_v55, %v1673_v43  ;;  %1933 = vmatpush.msra.mxu2 %v2658_v6  ;;  %v2660_v36 = vpop.eup %2659  ;;  %v1609_v17 = vadd.f32 %v3837_v11, %v1608_v53  ;;  %v4806_v11 = vld [vmem:[#allocation47_spill] sm:$0xff]  ;;  %v4809_v43 = vld [vmem:[#allocation24_spill] sm:$0xff]  ;;  %v1511_v4 = vmul.f32 1.442695, %v1282_v2 }
 0x2b8   : > { %1905 = vmatpush.msrb.mxu3 %v4069_v5  ;;  %1833 = vmatmul.f32.gmra.mxu2 %v4245_v47  ;;  %v1306_v30 = vsub.f32 %v4806_v11, %v3578_v27 }
 0x2b9   : > { %v1675_v44 = vadd.f32 %v2660_v36, %v1674_v40  ;;  %1934 = vmatpush.msra.mxu2 %v2660_v36  ;;  %v1610_v5 = vadd.f32 %v3823_v8, %v1609_v17  ;;  %1862 = vmatmul.f32.gmra.mxu3 %v4248_v41  ;;  %v1563_v8 = vmul.f32 1.442695, %v1308_v13  ;;  %v4812_v17 = vld [vmem:[#allocation91_spill] sm:$0xff] }
 0x2ba   : > { %1906 = vmatpush.msrb.mxu3 %v4057_v56  ;;  %v4807_v56 = vld [vmem:[#allocation67_spill] sm:$0xff]  ;;  %v1559_v40 = vmul.f32 1.442695, %v1306_v30  ;;  %v4815_v30 = vld [vmem:[#allocation85_spill] sm:$0xff] }
 0x2bb   : > { %v1676_v59 = vadd.f32 %v2658_v6, %v1675_v44  ;;  %1935 = vmatpush.msra.mxu2 %v2656_v55  ;;  %v1280_v14 = vsub.f32 %v4807_v56, %v3578_v27  ;;  %v1611_v0 = vadd.f32 %v3811_v39, %v1610_v5  ;;  %v1304_v6 = vsub.f32 %v4809_v43, %v3578_v27  ;;  %v4810_v39 = vld [vmem:[#allocation75_spill] sm:$0xff]  ;;  %v4819_v43 = vld [vmem:[#allocation93_spill] sm:$0xff] }
 0x2bc   : > { %1907 = vmatpush.msrb.mxu3 %v4045_v57  ;;  %v1503_v57 = vmul.f32 1.442695, %v1278_v34  ;;  %v1284_v53 = vsub.f32 %v4810_v39, %v3578_v27  ;;  %v4813_v13 = vld [vmem:[#allocation79_spill] sm:$0xff]  ;;  %2661 = vpow2.f32 %v1563_v8  ;;  %v4278_v34 = vld [vmem:[%s2969_s9 + $0x70] sm:$0xff] }
 0x2bd   : > { %v1677_v58 = vadd.f32 %v2654_v10, %v1676_v59  ;;  %1936 = vmatpush.msra.mxu2 %v2652_v51  ;;  %v1612_v55 = vadd.f32 %v3801_v52, %v1611_v0  ;;  %v4811_v10 = vld [vmem:[#allocation21_spill] sm:$0xff]  ;;  %v1507_v51 = vmul.f32 1.442695, %v1280_v14  ;;  %v1286_v44 = vsub.f32 %v4813_v13, %v3578_v27 }
 0x2be   : > { %1908 = vmatpush.msrb.mxu3 %v4031_v29  ;;  %v1302_v29 = vsub.f32 %v4811_v10, %v3578_v27  ;;  %2663 = vpow2.f32 %v1503_v57  ;;  %v1555_v5 = vmul.f32 1.442695, %v1304_v6  ;;  %v1515_v59 = vmul.f32 1.442695, %v1284_v53  ;;  %v4817_v0 = vld [vmem:[#allocation89_spill] sm:$0xff] }
 0x2bf   : > { %v1678_v36 = vadd.f32 %v2650_v26, %v1677_v58  ;;  %1937 = vmatpush.msra.mxu2 %v2648_v12  ;;  %v1613_v23 = vadd.f32 %v4812_v17, %v1612_v55  ;;  %v4281_v26 = vld [vmem:[%s2969_s9 + $0x78] sm:$0xff]  ;;  %2665 = vpow2.f32 %v1559_v40  ;;  %v1290_v7 = vsub.f32 %v4817_v0, %v3578_v27  ;;  %v4820_v55 = vld [vmem:[#allocation12_spill] sm:$0xff] }
 0x2c0   : > { %1909 = vmatpush.msrb.mxu3 %v4013_v49  ;;  %v4814_v49 = vld [vmem:[#allocation104_spill] sm:$0xff]  ;;  %1836 = vmatmul.f32.gmra.mxu2 %v4278_v34  ;;  %2667 = vpow2.f32 %v1507_v51  ;;  %v1551_v14 = vmul.f32 1.442695, %v1302_v29  ;;  %v1519_v2 = vmul.f32 1.442695, %v1286_v44  ;;  %v1292_v6 = vsub.f32 %v4819_v43, %v3578_v27 }
 0x2c1   : > { %v1679_v52 = vadd.f32 %v4220_v25, %v1678_v36  ;;  %1938 = vmatpush.msra.mxu2 %v4215_v1  ;;  %v1300_v12 = vsub.f32 %v4814_v49, %v3578_v27  ;;  %v1614_v11 = vadd.f32 %v4168_v54, %v1613_v23  ;;  %v1288_v25 = vsub.f32 %v4815_v30, %v3578_v27  ;;  %v4816_v1 = vld [vmem:[#allocation102_spill] sm:$0xff] }
 0x2c2   : > { %1910 = vmatpush.msrb.mxu3 %v4001_v48  ;;  %v1298_v56 = vsub.f32 %v4816_v1, %v3578_v27  ;;  %2669 = vpow2.f32 %v1511_v4  ;;  %v4305_v58 = vpop.eup %2661  ;;  %v1527_v36 = vmul.f32 1.442695, %v1290_v7  ;;  %v1531_v29 = vmul.f32 1.442695, %v1292_v6  ;;  %v4824_v7 = vld [vmem:[#allocation13_spill] sm:$0xff]  ;;  %v4829_v6 = vld [vmem:[#allocation59_spill] sm:$0xff] }
 0x2c3   : > { %v1680_v48 = vadd.f32 %v4212_v50, %v1679_v52  ;;  %1939 = vmatpush.msra.mxu2 %v4207_v35  ;;  %v1615_v54 = vadd.f32 %v4161_v24, %v1614_v11  ;;  %1865 = vmatmul.f32.gmra.mxu3 %v4281_v26  ;;  %v1547_v8 = vmul.f32 1.442695, %v1300_v12  ;;  %2671 = vpow2.f32 %v1555_v5 }
 0x2c4   : > { %1911 = vmatpush.msrb.mxu3 %v3990_v18  ;;  %v4818_v18 = vld [vmem:[#allocation100_spill] sm:$0xff]  ;;  %2673 = vpow2.f32 %v1515_v59  ;;  %v1523_v57 = vmul.f32 1.442695, %v1288_v25  ;;  %v1543_v53 = vmul.f32 1.442695, %v1298_v56 }
 0x2c5   : > { %v1681_v50 = vadd.f32 %v4203_v16, %v1680_v48  ;;  %1940 = vmatpush.msra.mxu2 %v4196_v63  ;;  %v1296_v35 = vsub.f32 %v4818_v18, %v3578_v27  ;;  %v1616_v24 = vadd.f32 %v4150_v22, %v1615_v54  ;;  %v4821_v63 = vld [vmem:[#allocation96_spill] sm:$0xff]  ;;  %2675 = vpow2.f32 %v1551_v14  ;;  %v4822_v48 = vld [vmem:[#allocation41_spill] sm:$0xff]  ;;  %v4823_v14 = vld [vmem:[#allocation14_spill] sm:$0xff] }
 0x2c6   : > { %1912 = vmatpush.msrb.mxu3 %v3977_v42  ;;  %v4312_v42 = vpop.eup %2663  ;;  %v1294_v39 = vsub.f32 %v4821_v63, %v3578_v27  ;;  %2677 = vpow2.f32 %v1519_v2  ;;  %v4826_v18 = vld [vmem:[#allocation58_spill] sm:$0xff] }
 0x2c7   : > { %v1682_v16 = vadd.f32 %v4190_v38, %v1681_v50  ;;  %1941 = vmatpush.msra.mxu2 %v4177_v15  ;;  %v1617_v22 = vadd.f32 %v4131_v45, %v1616_v24  ;;  %v4318_v40 = vpop.eup %2665  ;;  %v1539_v10 = vmul.f32 1.442695, %v1296_v35  ;;  %2679 = vpow2.f32 %v1547_v8  ;;  %v4828_v24 = vld [vmem:[#allocation54_spill] sm:$0xff] }
 0x2c8   : > { %1913 = vmatpush.msrb.mxu3 %v4820_v55  ;;  %v4322_v15 = vpop.eup %2667  ;;  %1885 = vmatmul.f32.vlgmr.msrb.gmra.mxu2 %v3972_v37  ;;  %2681 = vpow2.f32 %v1523_v57  ;;  %v1535_v23 = vmul.f32 1.442695, %v1294_v39  ;;  %v4830_v55 = vld [vmem:[#allocation65_spill] sm:$0xff] }
 0x2c9   : > { %v1683_v38 = vadd.f32 %v4312_v42, %v1682_v16  ;;  %1942 = vmatpush.msra.mxu2 %v4171_v46  ;;  %v1618_v27 = vadd.f32 %v4119_v19, %v1617_v22  ;;  %v2670_v45 = vpop.eup %2669  ;;  %2683 = vpow2.f32 %v1543_v53  ;;  %v4831_v22 = vld [vmem:[#allocation15_spill] sm:$0xff] }
 0x2ca   : > { %1956 = vmatpush.msra.mxu3 %v4305_v58  ;;  %v2672_v17 = vpop.eup %2671  ;;  %2685 = vpow2.f32 %v1527_v36 }
 0x2cb   : > { %v1684_v51 = vadd.f32 %v4322_v15, %v1683_v38  ;;  %v1619_v46 = vadd.f32 %v4107_v9, %v1618_v27  ;;  %1914 = vmatmul.f32.vlgmr.msrb.gmra.mxu3 %v3975_v21  ;;  %v2674_v13 = vpop.eup %2673  ;;  %2687 = vpow2.f32 %v1539_v10  ;;  %v4832_v38 = vld [vmem:[#allocation50_spill] sm:$0xff]  ;;  %v4833_v10 = vld [vmem:[#allocation80_spill] sm:$0xff]  ;;  %v4834_v27 = vld [vmem:[#allocation55_spill] sm:$0xff] }
 0x2cc   : > { %1957 = vmatpush.msra.mxu3 %v4318_v40  ;;  %v2676_v19 = vpop.eup %2675  ;;  %2689 = vpow2.f32 %v1531_v29  ;;  %v1173_v29 = vsub.f32 %v4834_v27, %v4833_v10 }
 0x2cd   : > { %v1685_v44 = vadd.f32 %v2670_v45, %v1684_v51  ;;  %v1620_v37 = vadd.f32 %v4094_v32, %v1619_v46  ;;  %v2678_v4 = vpop.eup %2677  ;;  %2691 = vpow2.f32 %v1535_v23 }
 0x2ce   : > { %1958 = vmatpush.msra.mxu3 %v2672_v17  ;;  %v2680_v49 = vpop.eup %2679 }
 0x2cf   : > { %v1686_v52 = vadd.f32 %v2674_v13, %v1685_v44  ;;  %v1621_v12 = vadd.f32 %v4075_v60, %v1620_v37  ;;  %v2682_v5 = vpop.eup %2681 }
 0x2d0   : > { %1959 = vmatpush.msra.mxu3 %v2676_v19  ;;  %v2684_v21 = vpop.eup %2683  ;;  %1888 = vmatmul.f32.gmra.mxu2 %v4025_v61  ;;  %v4825_v61 = vld [vmem:[#allocation44_spill] sm:$0xff] }
 0x2d1   : > { %v1687_v9 = vadd.f32 %v2678_v4, %v1686_v52  ;;  %v1622_v11 = vadd.f32 %v4063_v62, %v1621_v12  ;;  %v2686_v30 = vpop.eup %2685 }
 0x2d2   : > { %1960 = vmatpush.msra.mxu3 %v2680_v49  ;;  %v2688_v32 = vpop.eup %2687 }
 0x2d3   : > { %v1688_v25 = vadd.f32 %v2682_v5, %v1687_v9  ;;  %v1623_v59 = vadd.f32 %v4051_v3, %v1622_v11  ;;  %1917 = vmatmul.f32.gmra.mxu3 %v4822_v48  ;;  %v2690_v1 = vpop.eup %2689  ;;  %v4827_v3 = vld [vmem:[#allocation51_spill] sm:$0xff] }
 0x2d4   : > { %1961 = vmatpush.msra.mxu3 %v2684_v21  ;;  %v2692_v60 = vpop.eup %2691 }
 0x2d5   : > { %v1689_v56 = vadd.f32 %v2686_v30, %v1688_v25  ;;  %v1624_v54 = vadd.f32 %v4823_v14, %v1623_v59 }
 0x2d6   : > { %1962 = vmatpush.msra.mxu3 %v2688_v32 }
 0x2d7   : > { %v1690_v0 = vadd.f32 %v2690_v1, %v1689_v56  ;;  %v1625_v62 = vadd.f32 %v4824_v7, %v1624_v54  ;;  %v1718_v7 = vld [vmem:[#allocation4 + $0x18] sm:$0xff] }
 0x2d8   : > { %1963 = vmatpush.msra.mxu3 %v2692_v60  ;;  %1891 = vmatmul.f32.gmra.mxu2 %v4826_v18 }
 0x2d9   : > { %v1691_v2 = vadd.f32 %v2692_v60, %v1690_v0  ;;  %v1626_v50 = vadd.f32 %v4825_v61, %v1625_v62  ;;  %v1716_v60 = vld [vmem:[#allocation4 + $0x30] sm:$0xff] }
 0x2da   : > { %1964 = vmatpush.msra.mxu3 %v2690_v1 }
 0x2db   : > { %v1692_v35 = vadd.f32 %v2688_v32, %v1691_v2  ;;  %v1627_v8 = vadd.f32 %v4827_v3, %v1626_v50  ;;  %1920 = vmatmul.f32.gmra.mxu3 %v4828_v24 }
 0x2dc   : > { %1965 = vmatpush.msra.mxu3 %v2686_v30 }
 0x2dd   : > { %v1693_v43 = vadd.f32 %v2684_v21, %v1692_v35  ;;  %v1628_v57 = vadd.f32 %v4829_v6, %v1627_v8  ;;  %v1720_v8 = vld [vmem:[#allocation4 + $0x8] sm:$0xff] }
 0x2de   : > { %1966 = vmatpush.msra.mxu3 %v2682_v5 }
 0x2df   : > { %v1694_v16 = vadd.f32 %v2680_v49, %v1693_v43  ;;  %v1629_v63 = vadd.f32 %v4830_v55, %v1628_v57 }
 0x2e0   : > { %1967 = vmatpush.msra.mxu3 %v2678_v4  ;;  %1894 = vmatmul.f32.gmra.mxu2 %v4831_v22 }
 0x2e1   : > { %v1695_v39 = vadd.f32 %v2676_v19, %v1694_v16  ;;  %v1630_v53 = vrot.slane %v1629_v63, 4 }
 0x2e2   : > { %1968 = vmatpush.msra.mxu3 %v2674_v13  ;;  %v1174_v13 = vmul.f32 1.442695, %v1173_v29 }
 0x2e3   : > { %v1696_v36 = vadd.f32 %v2672_v17, %v1695_v39  ;;  %1923 = vmatmul.f32.gmra.mxu3 %v4832_v38  ;;  %v1631_v51 = vadd.f32 %v1630_v53, %v1629_v63  ;;  %v1722_v39 = vld [vmem:[#allocation4 + $0x28] sm:$0xff] }
 0x2e4   : > { %1969 = vmatpush.msra.mxu3 %v2670_v45  ;;  %2693 = vpow2.f32 %v1174_v13 }
 0x2e5   : > { %v1697_v23 = vadd.f32 %v4318_v40, %v1696_v36  ;;  %v1632_v44 = vrot.slane %v1631_v51, 2 }
 0x2e6   : > { %1970 = vmatpush.msra.mxu3 %v4322_v15 }
 0x2e7   : > { %v1698_v46 = vadd.f32 %v4305_v58, %v1697_v23  ;;  %v1633_v17 = vadd.f32 %v1632_v44, %v1631_v51  ;;  %v1565_v58 = vld [vmem:[#allocation3] sm:$0x3] }
 0x2e8   : > { %1971 = vmatpush.msra.mxu3 %v4312_v42  ;;  %1943 = vmatmul.f32.vlgmr.msra.gmra.mxu2 %v4184_v33 }
 0x2e9   : > { %v1699_v19 = vrot.slane %v1698_v46, 4  ;;  %v1634_v52 = vrot.slane %v1633_v17, 1 }
 0x2ea   : > { %v4355_v15 = vpop.eup %2693 }
 0x2eb   : > { %v1700_v45 = vadd.f32 %v1699_v19, %v1698_v46  ;;  %1972 = vmatmul.f32.vlgmr.msra.gmra.mxu3 %v4187_v28  ;;  %v1635_v49 = vadd.f32 %v1634_v52, %v1633_v17  ;;  %v1566_v33 = vmul.f32 %v4355_v15, %v1565_v58  ;;  %v1725_v1 = vperm.slane %v4355_v15, 0 }
 0x2ec   : > { %v1726_v17 = vperm.slane %v4355_v15, 1  ;;  %v1721_v15 = vld [vmem:[#allocation4 + $0x20] sm:$0xff] }
 0x2ed   : > { %v1701_v37 = vrot.slane %v1700_v45, 2  ;;  %v1731_v61 = vmul.f32 %v1725_v1, %v1718_v7  ;;  %v1733_v6 = vmul.f32 %v1725_v1, %v1720_v8  ;;  %v1735_v36 = vmul.f32 %v1725_v1, %v1722_v39 }
 0x2ef   : > { %v1702_v4 = vadd.f32 %v1701_v37, %v1700_v45 }
 0x2f0   : > { %1946 = vmatmul.f32.gmra.mxu2 %v4226_v31 }
 0x2f1   : > { %v1703_v40 = vrot.slane %v1702_v4, 1 }
 0x2f3   : > { %v1704_v42 = vadd.f32 %v1703_v40, %v1702_v4  ;;  %1975 = vmatmul.f32.gmra.mxu3 %v4229_v20  ;;  %v1717_v4 = vld [vmem:[#allocation4] sm:$0xff] }
 0x2f4   : > { %v1730_v58 = vmul.f32 %v1726_v17, %v1717_v4 }
 0x2f5   : > { %v1707_v12 = vrot.slane %v1704_v42, 7 }
 0x2f7   : > { %v1708_v28 = vsel %vm603_vm1, %v1635_v49, %v1707_v12 }
 0x2f8   : > { %v1710_v5 = vadd.f32 %v1708_v28, %v1566_v33  ;;  %1949 = vmatmul.f32.gmra.mxu2 %v4245_v47  ;;  %v1719_v28 = vld [vmem:[#allocation4 + $0x10] sm:$0xff] }
 0x2fa   : > { %1715 = vst.msk [vmem:[#allocation3] sm:$0x3] %vm3742_vm3, %v1710_v5 }
 0x2fb   : > { %1978 = vmatmul.f32.gmra.mxu3 %v4248_v41  ;;  %v1729_v41 = vmul.f32 %v1725_v1, %v1716_v60 }
 0x300   : > { %1952 = vmatmul.f32.gmra.mxu2 %v4278_v34 }
 0x303   : > { %1981 = vmatmul.f32.gmra.mxu3 %v4281_v26 }
 0x30b   : > { %v1770_v31 = vpop.f32.mrf.mxu2  ;;  %v1799_v20 = vpop.f32.mrf.mxu3 }
 0x30c   : > { %v1800_v48 = vadd.f32 %v1799_v20, %v1770_v31  ;;  %v1732_v31 = vmul.f32 %v1726_v17, %v1719_v28 }
 0x313   : > { %v1773_v21 = vpop.f32.mrf.mxu2 }
 0x314   : > { %v1802_v11 = vpop.f32.mrf.mxu3 }
 0x315   : > { %v1803_v0 = vadd.f32 %v1802_v11, %v1773_v21 }
 0x31b   : > { %v1776_v30 = vpop.f32.mrf.mxu2 }
 0x31c   : > { %v1805_v25 = vpop.f32.mrf.mxu3 }
 0x31d   : > { %v1806_v35 = vadd.f32 %v1805_v25, %v1776_v30 }
 0x323   : > { %v1779_v32 = vpop.f32.mrf.mxu2 }
 0x324   : > { %v1808_v59 = vpop.f32.mrf.mxu3 }
 0x325   : > { %v1809_v55 = vadd.f32 %v1808_v59, %v1779_v32  ;;  %v1734_v59 = vmul.f32 %v1726_v17, %v1721_v15 }
 0x32b   : > { %v1828_v56 = vpop.f32.mrf.mxu2 }
 0x32c   : > { %v1829_v47 = vadd.f32 %v1828_v56, %v1800_v48  ;;  %v1857_v14 = vpop.f32.mrf.mxu3 }
 0x32e   : > { %v1858_v54 = vadd.f32 %v1857_v14, %v1829_v47  ;;  %v1723_v47 = vld [vmem:[#allocation4 + $0x38] sm:$0xff] }
 0x330   : > { %v1985_v34 = vadd.f32 %v1858_v54, %v1729_v41  ;;  %v1736_v54 = vmul.f32 %v1726_v17, %v1723_v47 }
 0x332   : > { %1993 = vst [vmem:[#allocation4 + $0x30] sm:$0xff] %v1985_v34 }
 0x333   : > { %v1831_v26 = vpop.f32.mrf.mxu2 }
 0x334   : > { %v1832_v62 = vadd.f32 %v1831_v26, %v1803_v0  ;;  %v1860_v2 = vpop.f32.mrf.mxu3 }
 0x336   : > { %v1861_v50 = vadd.f32 %v1860_v2, %v1832_v62 }
 0x338   : > { %v1987_v18 = vadd.f32 %v1861_v50, %v1731_v61 }
 0x33a   : > { %1995 = vst [vmem:[#allocation4 + $0x18] sm:$0xff] %v1987_v18 }
 0x33b   : > { %v1834_v3 = vpop.f32.mrf.mxu2 }
 0x33c   : > { %v1835_v24 = vadd.f32 %v1834_v3, %v1806_v35  ;;  %v1863_v43 = vpop.f32.mrf.mxu3 }
 0x33e   : > { %v1864_v57 = vadd.f32 %v1863_v43, %v1835_v24 }
 0x340   : > { %v1989_v16 = vadd.f32 %v1864_v57, %v1733_v6 }
 0x342   : > { %1997 = vst [vmem:[#allocation4 + $0x8] sm:$0xff] %v1989_v16 }
 0x343   : > { %v1837_v63 = vpop.f32.mrf.mxu2 }
 0x344   : > { %v1838_v53 = vadd.f32 %v1837_v63, %v1809_v55 }
 0x346   : > { %v1866_v22 = vpop.f32.mrf.mxu3 }
 0x347   : > { %v1867_v38 = vadd.f32 %v1866_v22, %v1838_v53 }
 0x349   : > { %v1991_v10 = vadd.f32 %v1867_v38, %v1735_v36 }
 0x34b   : > { %1999 = vst [vmem:[#allocation4 + $0x28] sm:$0xff] %v1991_v10  ;;  %v1886_v27 = vpop.f32.mrf.mxu2 }
 0x34e   : > { %v1915_v29 = vpop.f32.mrf.mxu3 }
 0x34f   : > { %v1916_v45 = vadd.f32 %v1915_v29, %v1886_v27 }
 0x353   : > { %v1889_v51 = vpop.f32.mrf.mxu2 }
 0x356   : > { %v1918_v23 = vpop.f32.mrf.mxu3 }
 0x357   : > { %v1919_v12 = vadd.f32 %v1918_v23, %v1889_v51 }
 0x35b   : > { %v1892_v46 = vpop.f32.mrf.mxu2 }
 0x35e   : > { %v1921_v13 = vpop.f32.mrf.mxu3 }
 0x35f   : > { %v1922_v11 = vadd.f32 %v1921_v13, %v1892_v46 }
 0x363   : > { %v1895_v44 = vpop.f32.mrf.mxu2 }
 0x366   : > { %v1924_v19 = vpop.f32.mrf.mxu3 }
 0x367   : > { %v1925_v56 = vadd.f32 %v1924_v19, %v1895_v44 }
 0x36b   : > { %v1944_v37 = vpop.f32.mrf.mxu2 }
 0x36c   : > { %v1945_v52 = vadd.f32 %v1944_v37, %v1916_v45 }
 0x36e   : > { %v1973_v40 = vpop.f32.mrf.mxu3 }
 0x36f   : > { %v1974_v42 = vadd.f32 %v1973_v40, %v1945_v52 }
 0x371   : > { %v1986_v49 = vadd.f32 %v1974_v42, %v1730_v58 }
 0x373   : > { %1994 = vst [vmem:[#allocation4] sm:$0xff] %v1986_v49  ;;  %v1947_v33 = vpop.f32.mrf.mxu2 }
 0x374   : > { %v1948_v5 = vadd.f32 %v1947_v33, %v1919_v12 }
 0x376   : > { %v1976_v9 = vpop.f32.mrf.mxu3 }
 0x377   : > { %v1977_v20 = vadd.f32 %v1976_v9, %v1948_v5 }
 0x379   : > { %v1988_v21 = vadd.f32 %v1977_v20, %v1732_v31 }
 0x37b   : > { %1996 = vst [vmem:[#allocation4 + $0x10] sm:$0xff] %v1988_v21  ;;  %v1950_v30 = vpop.f32.mrf.mxu2 }
 0x37c   : > { %v1951_v25 = vadd.f32 %v1950_v30, %v1922_v11 }
 0x37e   : > { %v1979_v32 = vpop.f32.mrf.mxu3 }
 0x37f   : > { %v1980_v48 = vadd.f32 %v1979_v32, %v1951_v25 }
 0x381   : > { %v1990_v1 = vadd.f32 %v1980_v48, %v1734_v59 }
 0x383   : > { %1998 = vst [vmem:[#allocation4 + $0x20] sm:$0xff] %v1990_v1  ;;  %v1953_v60 = vpop.f32.mrf.mxu2 }
 0x384   : > { %v1954_v14 = vadd.f32 %v1953_v60, %v1925_v56 }
 0x386   : > { %v1982_v41 = vpop.f32.mrf.mxu3 }
 0x387   : > { %v1983_v34 = vadd.f32 %v1982_v41, %v1954_v14  ;;  %2005 = sbr.rel (%p2328_p6) target bundleno = 934 (0x3a6), region = 63 }
 0x389   : > { %v1992_v0 = vadd.f32 %v1983_v34, %v1736_v54 }
 0x38b   : > { %2000 = vst [vmem:[#allocation4 + $0x38] sm:$0xff] %v1992_v0 }
 0x38c   : > { %v2006_v26 = vld [vmem:[#allocation3] sm:$0x3]  ;;  %v2011_v50 = vld [vmem:[#allocation4 + $0x30] sm:$0xff]  ;;  %v2012_v18 = vld [vmem:[#allocation4] sm:$0xff] }
 0x38d   : > { %2695 = vrcp.f32 %v2006_v26  ;;  %v2013_v35 = vld [vmem:[#allocation4 + $0x18] sm:$0xff]  ;;  %v2014_v24 = vld [vmem:[#allocation4 + $0x10] sm:$0xff]  ;;  %v2015_v43 = vld [vmem:[#allocation4 + $0x8] sm:$0xff] }
 0x38e   : > { %v2016_v55 = vld [vmem:[#allocation4 + $0x20] sm:$0xff]  ;;  %v2017_v39 = vld [vmem:[#allocation4 + $0x28] sm:$0xff] }
 0x392   : > { %v2018_v22 = vld [vmem:[#allocation4 + $0x38] sm:$0xff] }
 0x393   : > { %v2696_v7 = vpop.eup %2695 }
 0x394   : > { %v2008_v62 = vmul.f32 %v2696_v7, %v2006_v26 }
 0x396   : > { %v2009_v2 = vsub.f32 2.0, %v2008_v62 }
 0x398   : > { %v2010_v61 = vmul.f32 %v2696_v7, %v2009_v2 }
 0x39a   : > { %v2020_v3 = vperm.slane %v2010_v61, 0  ;;  %v2021_v8 = vperm.slane %v2010_v61, 1 }
 0x39c   : > { %v2024_v6 = vmul.f32 %v2020_v3, %v2011_v50  ;;  %v2025_v57 = vmul.f32 %v2021_v8, %v2012_v18  ;;  %v2026_v16 = vmul.f32 %v2020_v3, %v2013_v35  ;;  %v2027_v63 = vmul.f32 %v2021_v8, %v2014_v24 }
 0x39d   : > { %v2028_v53 = vmul.f32 %v2020_v3, %v2015_v43  ;;  %v2029_v36 = vmul.f32 %v2021_v8, %v2016_v55  ;;  %v2030_v38 = vmul.f32 %v2020_v3, %v2017_v39  ;;  %v2031_v10 = vmul.f32 %v2021_v8, %v2018_v22 }
 0x39e   : > { %2032 = vst [vmem:[%s2971_s20] sm:$0xff] %v2024_v6 }
 0x39f   : > { %2033 = vst [vmem:[%s2971_s20 + $0x8] sm:$0xff] %v2025_v57 }
 0x3a0   : > { %2034 = vst [vmem:[%s2971_s20 + $0x10] sm:$0xff] %v2026_v16 }
 0x3a1   : > { %2035 = vst [vmem:[%s2971_s20 + $0x18] sm:$0xff] %v2027_v63 }
 0x3a2   : > { %2036 = vst [vmem:[%s2971_s20 + $0x20] sm:$0xff] %v2028_v53 }
 0x3a3   : > { %2037 = vst [vmem:[%s2971_s20 + $0x28] sm:$0xff] %v2029_v36 }
 0x3a4   : > { %2038 = vst [vmem:[%s2971_s20 + $0x30] sm:$0xff] %v2030_v38 }
 0x3a5   : > { %2039 = vst [vmem:[%s2971_s20 + $0x38] sm:$0xff] %v2031_v10 }
 0x3a6 PF: > { %s2334_s2 = sshll.u32 %s2795_s18, 6  ;;  %s2055_s9 = sshll.u32 %s2971_s20, 4  ;;  %s2056_s9 = int_to_ptr.vmem [resolvable:$true] %s2055_s9 }
 0x3a7   : > { %s2054_s25 = scalar_lea.hbm %s4431_s3, %s2334_s2  ;;  %s4836_s11 = sand.u32 1, %s2775_s13  }
 0x3a8   : > { %s2057_s10 = sshll.u32 %s2054_s25, 4  ;;  %s2041_s22 = scalar_lea.sflag [#allocation7], %s4836_s11  ;;  %s2058_s10 = int_to_ptr.hbm [resolvable:$true] %s2057_s10 }
 0x3a9   : > { %s2711_s23 = sshra.s32 %s2058_s10, 4  ;;  %s2717_s18 = scalar_lea.hbm %s4431_s3, 128  ;;  %s2712_s23 = int_to_ptr.hbm [resolvable:$true] %s2711_s23 }
 0x3aa   : > { %s2713_s27 = scalar_lea.hbm %s2712_s23, 64  ;;  %p2718_p11 = scmp.lt.s32.totalorder %s2712_s23, %s4431_s3 }
 0x3ab   : > { %p2714_p8 = scmp.ne.s32.totalorder %s2712_s23, %s2713_s27  ;;  %p2719_p13 = scmp.lt.s32.totalorder %s2717_s18, %s2713_s27 }
 0x3ad   : > { %p2715_p9 = pnand %p2714_p8, %p2905_p7  ;;  %p2720_p0 = por %p2719_p13, %p2718_p11 }
 0x3af   : > { %p2716_p10 = pneg %p2715_p9 }
 0x3b1   : > { %p2721_p1 = pnand %p2720_p0, %p2716_p10 }
 0x3b3   : > { %2724 = shalt.err (!%p2721_p1)
}
 0x3b4   : > { %s2811_s20 = smov 256   ;;  %s2812_s15 = smov 16  }
 0x3b5   : > { %2346 = dma.vmem_to_hbm [thread:$0]  (%p2905_p7), %s2056_s9, 1024, %s2058_s10, %s2041_s22, %s2811_s20, %s2811_s20, %s2812_s15  }
 0x3b6 PF: > { %p2352_p2 = scmp.ge.s32.totalorder %s2807_s21, 2  ;;  %s2072_s5 = sand.u32 1, %s2771_s12  }
 0x3b7   : > { %s2073_s2 = scalar_lea.sflag [#allocation7], %s2072_s5 }
 0x3b8   : > { %p2349_p3 = pnand %p2352_p2, %p2913_p12 }
 0x3ba   : > { %p2350_p4 = pneg %p2349_p3 }
 0x3bc   : > { %2766 = dma.done.wait (%p2350_p4), %s2073_s2, 1024  }
 0x3bd   : > { %2768 = vsyncadd (%p2350_p4), %s2073_s2, 4294966272  ;;  %s16_s21 = sadd.s32 1, %s2807_s21   ;;  %s4837_s18 = sld [smem:[#allocation9_spill]] }
 0x3be   : > { %p13_p5 = scmp.ge.s32.totalorder %s16_s21, 6   ;;  %s4838_s30 = sld [smem:[#allocation10_spill]] }
 0x3bf   : > { %s4839_s20 = sld [smem:[#allocation11_spill]]  ;;  %s4840_s12 = smov %s2775_s13 }
 0x3c0   : > { %s4841_s13 = smov %s2779_s14  ;;  %s4842_s14 = smov %s2918_s7 }
 0x3c1   : > { %s4843_s15 = smov %s2787_s16  ;;  %s4844_s16 = smov %s2921_s8 }
 0x3c2   : > { %s4845_s17 = smov %s2799_s19  ;;  %15 = sbr.rel (!%p13_p5) target bundleno = 8 (0x8), region = 109 }
 0x3c4   : > { %s4846_s19 = smov %s4838_s30 }
 0x3c7   :  { %2079 = vsyncpa [#allocation7], 1 }
 0x3c8   :  { %2081 = vsyncpa [#allocation7 + $0x1], 1 }

</bundles_post_ra>
